<compile_context>
chip_gen: v5e
topology: v5e:2x2
jax: 0.10.0
libtpu: 0.0.40
codegen_flags: <defaults>
</compile_context>

<pallas_src>
from functools import partial

import numpy as np
import jax
import jax.numpy as jnp
from jax import lax
from jax.experimental import pallas as pl
from jax.experimental.pallas import tpu as pltpu

D_IN = 1024
D_HID = 256
D_OUT = 32
D_OUT_PAD = 128  # lane-dense output slab; sliced back to D_OUT in the wrapper


def _round_up(x, m):
    return ((x + m - 1) // m) * m


def mlp_kernel(x_ref, w1_ref, b1_ref, w2_ref, b2_ref, o_ref):
    # x_ref: (tm, 1024) f32, w1_ref: (1024, 256) bf16, b1_ref: (1, 256) f32,
    # w2_ref: (256, 128) bf16 (zero-padded cols), b2_ref: (1, 128) f32,
    # o_ref: (tm, 128) f32.
    #
    # First GELU: tanh-approx in bf16 -> tanh goes to the EUP, the small
    # polynomial runs packed bf16 on the VPU, and the result feeds the bf16
    # MXU with no separate cast pass.
    x_bf = x_ref[...].astype(jnp.bfloat16)
    h = jax.nn.gelu(x_bf, approximate=True)
    h1 = jnp.dot(h, w1_ref[...],
                 preferred_element_type=jnp.float32) + b1_ref[...]
    # Hidden GELU: tanh-approx in f32 (tanh on EUP), then cast for the MXU.
    h2 = jax.nn.gelu(h1, approximate=True)
    o = jnp.dot(h2.astype(jnp.bfloat16), w2_ref[...],
                preferred_element_type=jnp.float32) + b2_ref[...]
    o_ref[...] = o


def mlp_pallas(x_flat, w1, b1, w2, b2, *, tm=1024):
    """x_flat: (M, 1024) f32 -> (M, 32) f32 (GELU->Linear->GELU->Linear)."""
    M = x_flat.shape[0]

    # Row tile: default 1024 rows, clamped (8-row aligned) for tiny inputs.
    tm_eff = min(tm, _round_up(M, 8))
    # If there is enough work but only one tile would result, split into two
    # so ("parallel",) can shard rows across both TensorCores on v7x.
    if M > 512 and pl.cdiv(M, tm_eff) < 2:
        tm_eff = _round_up(pl.cdiv(M, 2), 8)
    grid = (pl.cdiv(M, tm_eff),)
    # No row padding: ragged last block is handled by Pallas; any garbage in
    # rows >= M stays confined to those rows (per-row MLP) and never reaches
    # the caller because out_shape has exactly M rows.

    # Weights cast to bf16 once (bf16-native MXU, half the weight DMA).
    # Second-layer weight/bias zero-padded to 128 output lanes so the store
    # is a full-width unmasked vst.  Constant-index BlockSpecs keep all four
    # VMEM-resident across the grid; at ~0.6 MiB (incl. default double
    # buffers) single-buffering them (pl.Buffered(1)) buys no needed headroom
    # at this tile size, so it is not used.
    w1_b = w1.astype(jnp.bfloat16)
    w2_b = jnp.zeros((D_HID, D_OUT_PAD), jnp.bfloat16).at[:, :D_OUT].set(
        w2.astype(jnp.bfloat16))
    b2_p = jnp.zeros((1, D_OUT_PAD), jnp.float32).at[:, :D_OUT].set(b2)

    out = pl.pallas_call(
        mlp_kernel,
        out_shape=jax.ShapeDtypeStruct((M, D_OUT_PAD), jnp.float32),
        grid=grid,
        in_specs=[
            pl.BlockSpec((tm_eff, D_IN), lambda i: (i, 0)),
            pl.BlockSpec((D_IN, D_HID), lambda i: (0, 0)),
            pl.BlockSpec((1, D_HID), lambda i: (0, 0)),
            pl.BlockSpec((D_HID, D_OUT_PAD), lambda i: (0, 0)),
            pl.BlockSpec((1, D_OUT_PAD), lambda i: (0, 0)),
        ],
        out_specs=pl.BlockSpec((tm_eff, D_OUT_PAD), lambda i: (i, 0)),
        compiler_params=pltpu.CompilerParams(
            dimension_semantics=("parallel",)
        ),
    )(x_flat, w1_b, b1, w2_b, b2_p)
    return out[:, :D_OUT]


def ward_agglomerative(X, n_clusters):
    """Host-side ward-linkage agglomerative clustering (vectorized NumPy).

    Merge criterion matches ward linkage (minimum increase of within-cluster
    variance).  Label numbering follows lowest-member-index order; it may
    differ from sklearn's numbering, but the partition follows the same
    linkage rule.
    """
    n = X.shape[0]
    if n <= n_clusters:
        return np.arange(n, dtype=np.int32)
    centroids = X.astype(np.float64).copy()
    sizes = np.ones(n, dtype=np.float64)
    active = np.ones(n, dtype=bool)
    parent = np.arange(n)
    n_active = n
    while n_active > n_clusters:
        idx = np.flatnonzero(active)
        C = centroids[idx]
        S = sizes[idx]
        diff = C[:, None, :] - C[None, :, :]
        d2 = np.einsum("ijk,ijk->ij", diff, diff)
        w = (S[:, None] * S[None, :]) / (S[:, None] + S[None, :])
        D = w * d2
        np.fill_diagonal(D, np.inf)
        a, b = np.unravel_index(np.argmin(D), D.shape)
        if a > b:
            a, b = b, a
        i, j = idx[a], idx[b]
        ni, nj = sizes[i], sizes[j]
        centroids[i] = (ni * centroids[i] + nj * centroids[j]) / (ni + nj)
        sizes[i] = ni + nj
        active[j] = False
        parent[j] = i
        n_active -= 1

    def find(k):
        while parent[k] != k:
            k = parent[k]
        return k

    roots = {}
    labels = np.empty(n, dtype=np.int32)
    for m in range(n):
        r = find(m)
        if r not in roots:
            roots[r] = len(roots)
        labels[m] = roots[r]
    return labels


class HierarchicalClusteringLayerPallas:
    def __init__(self, input_dim, num_clusters, key):
        assert input_dim == D_IN
        self.input_dim = input_dim
        self.num_clusters = num_clusters
        k1, k2, k3, k4 = jax.random.split(key, 4)
        # nn.Linear default init: U(-1/sqrt(fan_in), 1/sqrt(fan_in))
        lim1 = 1.0 / np.sqrt(D_IN)
        lim2 = 1.0 / np.sqrt(D_HID)
        # Stored as (in, out) so the kernel does x @ W + b.
        self.w1 = jax.random.uniform(k1, (D_IN, D_HID), jnp.float32, -lim1, lim1)
        self.b1 = jax.random.uniform(k2, (1, D_HID), jnp.float32, -lim1, lim1)
        self.w2 = jax.random.uniform(k3, (D_HID, D_OUT), jnp.float32, -lim2, lim2)
        self.b2 = jax.random.uniform(k4, (1, D_OUT), jnp.float32, -lim2, lim2)
        self._mlp = jax.jit(
            partial(mlp_pallas, w1=self.w1, b1=self.b1, w2=self.w2, b2=self.b2)
        )

    def __call__(self, x):
        # x: (batch, num_samples, 1024)
        B, N, F = x.shape
        assert F == self.input_dim
        x_flat = x.reshape(B * N, F)
        feats = self._mlp(x_flat)
        feats = jax.block_until_ready(feats)
        feats_np = np.asarray(feats)
        # TODO(synk): sklearn AgglomerativeClustering has no Pallas equivalent
        # (sequential, data-dependent merges) — done on host per batch element.
        labels = []
        for b in range(B):
            batch_feats = feats_np[b * N:(b + 1) * N]
            labels.append(ward_agglomerative(batch_feats, self.num_clusters))
        labels_np = np.concatenate(labels).reshape(B, N)
        return jnp.asarray(labels_np)  # squeeze() of (B, N, 1) -> (B, N)


if __name__ == "__main__":
    key = jax.random.PRNGKey(0)
    k_param, k_x = jax.random.split(key)

    batch, num_samples = 2, 8
    num_clusters = 3
    layer = HierarchicalClusteringLayerPallas(D_IN, num_clusters, k_param)

    x = jax.random.normal(k_x, (batch, num_samples, D_IN), dtype=jnp.float32)
    out = layer(x)
    out = jax.block_until_ready(out)

    assert out.shape == (batch, num_samples)
    assert int(jnp.max(out)) < num_clusters and int(jnp.min(out)) >= 0
    print("KERNEL_OK")
</pallas_src>

<mosaic_0001>
module attributes {stable_mosaic.version = 11 : i64} {
  func.func @mlp_kernel(%arg0: i32, %arg1: memref<16x1024xf32, #tpu.memory_space<vmem>>, %arg2: memref<1024x256xbf16, #tpu.memory_space<vmem>>, %arg3: memref<1x256xf32, #tpu.memory_space<vmem>>, %arg4: memref<256x128xbf16, #tpu.memory_space<vmem>>, %arg5: memref<1x128xf32, #tpu.memory_space<vmem>>, %arg6: memref<16x128xf32, #tpu.memory_space<vmem>>) attributes {dimension_semantics = [#tpu.dimension_semantics<parallel>], iteration_bounds = array<i64: 1>, scalar_prefetch = 0 : i64, scratch_operands = 0 : i64, tpu.core_type = #tpu.core_type<tc>, window_params = [{transform_indices = @transform_0, window_bounds = array<i64: 16, 1024>}, {pipeline_mode = #tpu.pipeline_mode<synchronous>, transform_indices = @transform_1, window_bounds = array<i64: 1024, 256>}, {pipeline_mode = #tpu.pipeline_mode<synchronous>, transform_indices = @transform_2, window_bounds = array<i64: 1, 256>}, {pipeline_mode = #tpu.pipeline_mode<synchronous>, transform_indices = @transform_3, window_bounds = array<i64: 256, 128>}, {pipeline_mode = #tpu.pipeline_mode<synchronous>, transform_indices = @transform_4, window_bounds = array<i64: 1, 128>}, {transform_indices = @transform_5, window_bounds = array<i64: 16, 128>}]} {
    %c0 = arith.constant 0 : index
    %c0_0 = arith.constant 0 : index
    %0 = vector.load %arg1[%c0, %c0_0] : memref<16x1024xf32, #tpu.memory_space<vmem>>, vector<16x1024xf32>
    %1 = arith.truncf %0 : vector<16x1024xf32> to vector<16x1024xbf16>
    %2 = arith.mulf %1, %1 : vector<16x1024xbf16>
    %3 = arith.mulf %1, %2 : vector<16x1024xbf16>
    %cst = arith.constant 4.467770e-02 : bf16
    %4 = vector.broadcast %cst : bf16 to vector<16x1024xbf16>
    %5 = arith.mulf %4, %3 : vector<16x1024xbf16>
    %6 = arith.addf %1, %5 : vector<16x1024xbf16>
    %cst_1 = arith.constant 7.968750e-01 : bf16
    %7 = vector.broadcast %cst_1 : bf16 to vector<16x1024xbf16>
    %8 = arith.mulf %7, %6 : vector<16x1024xbf16>
    %9 = math.tanh %8 : vector<16x1024xbf16>
    %cst_2 = arith.constant 1.000000e+00 : bf16
    %10 = vector.broadcast %cst_2 : bf16 to vector<16x1024xbf16>
    %11 = arith.addf %10, %9 : vector<16x1024xbf16>
    %cst_3 = arith.constant 5.000000e-01 : bf16
    %12 = vector.broadcast %cst_3 : bf16 to vector<16x1024xbf16>
    %13 = arith.mulf %12, %11 : vector<16x1024xbf16>
    %14 = arith.mulf %1, %13 : vector<16x1024xbf16>
    %c0_4 = arith.constant 0 : index
    %c0_5 = arith.constant 0 : index
    %15 = vector.load %arg2[%c0_4, %c0_5] : memref<1024x256xbf16, #tpu.memory_space<vmem>>, vector<1024x256xbf16>
    %cst_6 = arith.constant dense<0.000000e+00> : vector<16x256xf32>
    %16 = tpu.matmul %14, %15, %cst_6 {dimension_numbers = #tpu.dot_dimension_numbers<[1], [0], [0], [1], [0, 0, 1, 1], [], []>} : vector<16x1024xbf16>, vector<1024x256xbf16>, vector<16x256xf32> -> vector<16x256xf32>
    %c0_7 = arith.constant 0 : index
    %c0_8 = arith.constant 0 : index
    %17 = vector.load %arg3[%c0_7, %c0_8] : memref<1x256xf32, #tpu.memory_space<vmem>>, vector<1x256xf32>
    %18 = vector.broadcast %17 : vector<1x256xf32> to vector<16x256xf32>
    %19 = arith.addf %16, %18 : vector<16x256xf32>
    %20 = arith.mulf %19, %19 : vector<16x256xf32>
    %21 = arith.mulf %19, %20 : vector<16x256xf32>
    %cst_9 = arith.constant 4.471500e-02 : f32
    %22 = vector.broadcast %cst_9 : f32 to vector<16x256xf32>
    %23 = arith.mulf %22, %21 : vector<16x256xf32>
    %24 = arith.addf %19, %23 : vector<16x256xf32>
    %cst_10 = arith.constant 0.797884583 : f32
    %25 = vector.broadcast %cst_10 : f32 to vector<16x256xf32>
    %26 = arith.mulf %25, %24 : vector<16x256xf32>
    %27 = math.tanh %26 : vector<16x256xf32>
    %cst_11 = arith.constant 1.000000e+00 : f32
    %28 = vector.broadcast %cst_11 : f32 to vector<16x256xf32>
    %29 = arith.addf %28, %27 : vector<16x256xf32>
    %cst_12 = arith.constant 5.000000e-01 : f32
    %30 = vector.broadcast %cst_12 : f32 to vector<16x256xf32>
    %31 = arith.mulf %30, %29 : vector<16x256xf32>
    %32 = arith.mulf %19, %31 : vector<16x256xf32>
    %33 = arith.truncf %32 : vector<16x256xf32> to vector<16x256xbf16>
    %c0_13 = arith.constant 0 : index
    %c0_14 = arith.constant 0 : index
    %34 = vector.load %arg4[%c0_13, %c0_14] : memref<256x128xbf16, #tpu.memory_space<vmem>>, vector<256x128xbf16>
    %cst_15 = arith.constant dense<0.000000e+00> : vector<16x128xf32>
    %35 = tpu.matmul %33, %34, %cst_15 {dimension_numbers = #tpu.dot_dimension_numbers<[1], [0], [0], [1], [0, 0, 1, 1], [], []>} : vector<16x256xbf16>, vector<256x128xbf16>, vector<16x128xf32> -> vector<16x128xf32>
    %c0_16 = arith.constant 0 : index
    %c0_17 = arith.constant 0 : index
    %36 = vector.load %arg5[%c0_16, %c0_17] : memref<1x128xf32, #tpu.memory_space<vmem>>, vector<1x128xf32>
    %37 = vector.broadcast %36 : vector<1x128xf32> to vector<16x128xf32>
    %38 = arith.addf %35, %37 : vector<16x128xf32>
    %c0_18 = arith.constant 0 : index
    %c0_19 = arith.constant 0 : index
    %39 = vector.load %arg6[%c0_18, %c0_19] : memref<16x128xf32, #tpu.memory_space<vmem>>, vector<16x128xf32>
    tpu.vector_store %arg6[%c0_18, %c0_19], %38 {strides = array<i32>} : memref<16x128xf32, #tpu.memory_space<vmem>>, vector<16x128xf32>,
    return
  }
  func.func @transform_0(%arg0: i32) -> (i32, i32) {
    %c0_i32 = arith.constant 0 : i32
    %c0_i32_0 = arith.constant 0 : i32
    return %arg0, %c0_i32 : i32, i32
  }
  func.func @transform_1(%arg0: i32) -> (i32, i32) {
    %c0_i32 = arith.constant 0 : i32
    %c0_i32_0 = arith.constant 0 : i32
    %c0_i32_1 = arith.constant 0 : i32
    return %c0_i32, %c0_i32_0 : i32, i32
  }
  func.func @transform_2(%arg0: i32) -> (i32, i32) {
    %c0_i32 = arith.constant 0 : i32
    %c0_i32_0 = arith.constant 0 : i32
    %c0_i32_1 = arith.constant 0 : i32
    return %c0_i32, %c0_i32_0 : i32, i32
  }
  func.func @transform_3(%arg0: i32) -> (i32, i32) {
    %c0_i32 = arith.constant 0 : i32
    %c0_i32_0 = arith.constant 0 : i32
    %c0_i32_1 = arith.constant 0 : i32
    return %c0_i32, %c0_i32_0 : i32, i32
  }
  func.func @transform_4(%arg0: i32) -> (i32, i32) {
    %c0_i32 = arith.constant 0 : i32
    %c0_i32_0 = arith.constant 0 : i32
    %c0_i32_1 = arith.constant 0 : i32
    return %c0_i32, %c0_i32_0 : i32, i32
  }
  func.func @transform_5(%arg0: i32) -> (i32, i32) {
    %c0_i32 = arith.constant 0 : i32
    %c0_i32_0 = arith.constant 0 : i32
    return %arg0, %c0_i32 : i32, i32
  }
}

</mosaic_0001>

<bundles_post_ra>
// kernel: mlp_pallas.1
= control target key start
LH: loop header
LB: loop body
LE: loop exit
PB: predicated region body
PF: predicated region fallthrough
CT: control target
= control target key end

     0   :  { %10 = vsyncpa [#allocation3], 0  ;;  %s2982_s0 = inlined_call_operand.vmem [shape: f32[16,1024], index: 0, kind: input, shape index: {}]   ;;  %s2983_s1 = inlined_call_operand.hbm [shape: bf16[1024,256], index: 1, kind: input, shape index: {}]   ;;  %s2984_s2 = inlined_call_operand.vmem [shape: f32[1,256], index: 2, kind: input, shape index: {}]   ;;  %s2985_s3 = inlined_call_operand.vmem [shape: bf16[256,128], index: 3, kind: input, shape index: {}]   ;;  %s2986_s4 = inlined_call_operand.vmem [shape: f32[1,128], index: 4, kind: input, shape index: {}]   ;;  %s2987_s5 = inlined_call_operand.hbm [shape: f32[16,128], index: 5, kind: output, shape index: {}]  }
   0x1   :  { %11 = vsyncpa [#allocation4], 0  ;;  %s18_s20 = sshll.u32 %s2983_s1, 4  ;;  %s2455_s21 = smov [#allocation2]   ;;  %s19_s20 = int_to_ptr.hbm [resolvable:$true] %s18_s20 }
   0x2   :  { %s20_s22 = sshll.u32 %s2455_s21, 4  ;;  %s2456_s23 = smov 128   ;;  %s21_s22 = int_to_ptr.vmem [resolvable:$true] %s20_s22 }
   0x3   :  { %s2457_s24 = smov 8  }
   0x4   :  { %26 = dma.hbm_to_vmem [thread:$0]  %s19_s20, 16384, %s21_s22, [#allocation3], %s2456_s23, %s2456_s23, %s2457_s24  }
   0x5   :  { %2451 = dma.done.wait [#allocation3], 16384  }
   0x6   :  { %2452 = vsyncadd [#allocation3], 4294950912  ;;  %v1696_v0 = vld [vmem:[#allocation2 + $0x70] sm:$0xf]  ;;  %v2229_v1 = vld [vmem:[#allocation2 + $0x74] sm:$0xf0] }
   0x7   :  { %v1760_v2 = vld [vmem:[#allocation2 + $0xf0] sm:$0xf]  ;;  %v1697_v3 = vor.u32 %v2229_v1, %v1696_v0  ;;  %v2245_v4 = vld [vmem:[#allocation2 + $0xf4] sm:$0xf0]  ;;  %v1688_v11 = vld [vmem:[#allocation2 + $0x60] sm:$0xf] }
   0x8   :  { %v1824_v5 = vld [vmem:[#allocation2 + $0x170] sm:$0xf]  ;;  %v2261_v6 = vld [vmem:[#allocation2 + $0x174] sm:$0xf0]  ;;  %v1761_v7 = vor.u32 %v2245_v4, %v1760_v2  ;;  %v2227_v13 = vld [vmem:[#allocation2 + $0x64] sm:$0xf0] }
   0x9   :  { %v1825_v8 = vor.u32 %v2261_v6, %v1824_v5  ;;  %v1888_v9 = vld [vmem:[#allocation2 + $0x1f0] sm:$0xf]  ;;  %v2277_v10 = vld [vmem:[#allocation2 + $0x1f4] sm:$0xf0]  ;;  %1195 = vmatpush.bf16.msra.mxu0 %v1697_v3  ;;  %v1752_v14 = vld [vmem:[#allocation2 + $0xe0] sm:$0xf]  ;;  %v1689_v16 = vor.u32 %v2227_v13, %v1688_v11 }
   0xa   :  { %v1889_v12 = vor.u32 %v2277_v10, %v1888_v9  ;;  %v2243_v15 = vld [vmem:[#allocation2 + $0xe4] sm:$0xf0]  ;;  %1209 = vmatpush.bf16.msra.mxu1 %v1761_v7  ;;  %v1816_v18 = vld [vmem:[#allocation2 + $0x160] sm:$0xf]  ;;  %v1680_v23 = vld [vmem:[#allocation2 + $0x50] sm:$0xf] }
   0xb   :  { %1223 = vmatpush.bf16.msra.mxu2 %v1825_v8  ;;  %v1753_v17 = vor.u32 %v2243_v15, %v1752_v14  ;;  %v2259_v19 = vld [vmem:[#allocation2 + $0x164] sm:$0xf0]  ;;  %v1880_v20 = vld [vmem:[#allocation2 + $0x1e0] sm:$0xf]  ;;  %v2225_v24 = vld [vmem:[#allocation2 + $0x54] sm:$0xf0] }
   0xc   :  { %1237 = vmatpush.bf16.msra.mxu3 %v1889_v12  ;;  %v1817_v21 = vor.u32 %v2259_v19, %v1816_v18  ;;  %v2275_v22 = vld [vmem:[#allocation2 + $0x1e4] sm:$0xf0]  ;;  %v1744_v26 = vld [vmem:[#allocation2 + $0xd0] sm:$0xf]  ;;  %v2241_v27 = vld [vmem:[#allocation2 + $0xd4] sm:$0xf0]  ;;  %v1681_v29 = vor.u32 %v2225_v24, %v1680_v23 }
   0xd   :  { %v1881_v25 = vor.u32 %v2275_v22, %v1880_v20  ;;  %v1808_v28 = vld [vmem:[#allocation2 + $0x150] sm:$0xf]  ;;  %1196 = vmatpush.bf16.msra.mxu0 %v1689_v16  ;;  %v2257_v30 = vld [vmem:[#allocation2 + $0x154] sm:$0xf0]  ;;  %v1745_v33 = vor.u32 %v2241_v27, %v1744_v26  ;;  %v1672_v35 = vld [vmem:[#allocation2 + $0x40] sm:$0xf] }
   0xe   :  { %v1872_v31 = vld [vmem:[#allocation2 + $0x1d0] sm:$0xf]  ;;  %v2273_v32 = vld [vmem:[#allocation2 + $0x1d4] sm:$0xf0]  ;;  %1210 = vmatpush.bf16.msra.mxu1 %v1753_v17  ;;  %v1809_v34 = vor.u32 %v2257_v30, %v1808_v28  ;;  %v2223_v36 = vld [vmem:[#allocation2 + $0x44] sm:$0xf0] }
   0xf   :  { %1224 = vmatpush.bf16.msra.mxu2 %v1817_v21  ;;  %v1736_v37 = vld [vmem:[#allocation2 + $0xc0] sm:$0xf]  ;;  %v1873_v38 = vor.u32 %v2273_v32, %v1872_v31  ;;  %v2239_v39 = vld [vmem:[#allocation2 + $0xc4] sm:$0xf0]  ;;  %v1673_v44 = vor.u32 %v2223_v36, %v1672_v35  ;;  %v1664_v47 = vld [vmem:[#allocation2 + $0x30] sm:$0xf] }
  0x10   :  { %1238 = vmatpush.bf16.msra.mxu3 %v1881_v25  ;;  %v1800_v40 = vld [vmem:[#allocation2 + $0x140] sm:$0xf]  ;;  %v2255_v41 = vld [vmem:[#allocation2 + $0x144] sm:$0xf0]  ;;  %v1737_v45 = vor.u32 %v2239_v39, %v1736_v37  ;;  %v2221_v48 = vld [vmem:[#allocation2 + $0x34] sm:$0xf0] }
  0x11   :  { %v1864_v42 = vld [vmem:[#allocation2 + $0x1c0] sm:$0xf]  ;;  %v2271_v43 = vld [vmem:[#allocation2 + $0x1c4] sm:$0xf0]  ;;  %1197 = vmatpush.bf16.msra.mxu0 %v1681_v29  ;;  %v1801_v46 = vor.u32 %v2255_v41, %v1800_v40  ;;  %v1728_v49 = vld [vmem:[#allocation2 + $0xb0] sm:$0xf]  ;;  %v1665_v56 = vor.u32 %v2221_v48, %v1664_v47 }
  0x12   :  { %1211 = vmatpush.bf16.msra.mxu1 %v1745_v33  ;;  %v1865_v50 = vor.u32 %v2271_v43, %v1864_v42  ;;  %v2237_v51 = vld [vmem:[#allocation2 + $0xb4] sm:$0xf0]  ;;  %v1792_v52 = vld [vmem:[#allocation2 + $0x130] sm:$0xf]  ;;  %v1656_v59 = vld [vmem:[#allocation2 + $0x20] sm:$0xf] }
  0x13   :  { %1225 = vmatpush.bf16.msra.mxu2 %v1809_v34  ;;  %v2253_v53 = vld [vmem:[#allocation2 + $0x134] sm:$0xf0]  ;;  %v1856_v54 = vld [vmem:[#allocation2 + $0x1b0] sm:$0xf]  ;;  %v1729_v57 = vor.u32 %v2237_v51, %v1728_v49  ;;  %v2219_v60 = vld [vmem:[#allocation2 + $0x24] sm:$0xf0] }
  0x14   :  { %1239 = vmatpush.bf16.msra.mxu3 %v1873_v38  ;;  %v2269_v55 = vld [vmem:[#allocation2 + $0x1b4] sm:$0xf0]  ;;  %v1793_v58 = vor.u32 %v2253_v53, %v1792_v52  ;;  %v1720_v61 = vld [vmem:[#allocation2 + $0xa0] sm:$0xf]  ;;  %v2235_v63 = vld [vmem:[#allocation2 + $0xa4] sm:$0xf0]  ;;  %v1657_v4 = vor.u32 %v2219_v60, %v1656_v59 }
  0x15   :  { %1198 = vmatpush.bf16.msra.mxu0 %v1673_v44  ;;  %v1857_v62 = vor.u32 %v2269_v55, %v1856_v54  ;;  %v1784_v0 = vld [vmem:[#allocation2 + $0x120] sm:$0xf]  ;;  %v2251_v1 = vld [vmem:[#allocation2 + $0x124] sm:$0xf0]  ;;  %v1721_v5 = vor.u32 %v2235_v63, %v1720_v61  ;;  %v1648_v7 = vld [vmem:[#allocation2 + $0x10] sm:$0xf] }
  0x16   :  { %1212 = vmatpush.bf16.msra.mxu1 %v1737_v45  ;;  %v1848_v2 = vld [vmem:[#allocation2 + $0x1a0] sm:$0xf]  ;;  %v2267_v3 = vld [vmem:[#allocation2 + $0x1a4] sm:$0xf0]  ;;  %v1785_v6 = vor.u32 %v2251_v1, %v1784_v0  ;;  %v2217_v8 = vld [vmem:[#allocation2 + $0x14] sm:$0xf0] }
  0x17   :  { %1226 = vmatpush.bf16.msra.mxu2 %v1801_v46  ;;  %v1712_v9 = vld [vmem:[#allocation2 + $0x90] sm:$0xf]  ;;  %v1849_v10 = vor.u32 %v2267_v3, %v1848_v2  ;;  %v2233_v11 = vld [vmem:[#allocation2 + $0x94] sm:$0xf0]  ;;  %v1649_v16 = vor.u32 %v2217_v8, %v1648_v7  ;;  %v1640_v17 = vld [vmem:[#allocation2] sm:$0xf] }
  0x18   :  { %1240 = vmatpush.bf16.msra.mxu3 %v1865_v50  ;;  %v1776_v12 = vld [vmem:[#allocation2 + $0x110] sm:$0xf]  ;;  %v2249_v13 = vld [vmem:[#allocation2 + $0x114] sm:$0xf0]  ;;  %v2215_v18 = vld [vmem:[#allocation2 + $0x4] sm:$0xf0]  ;;  %v1713_v19 = vor.u32 %v2233_v11, %v1712_v9 }
  0x19   :  { %1199 = vmatpush.bf16.msra.mxu0 %v1665_v56  ;;  %v1840_v14 = vld [vmem:[#allocation2 + $0x190] sm:$0xf]  ;;  %v2265_v15 = vld [vmem:[#allocation2 + $0x194] sm:$0xf0]  ;;  %v1777_v20 = vor.u32 %v2249_v13, %v1776_v12  ;;  %v1704_v21 = vld [vmem:[#allocation2 + $0x80] sm:$0xf]  ;;  %v1641_v31 = vor.u32 %v2215_v18, %v1640_v17 }
  0x1a   :  { %1213 = vmatpush.bf16.msra.mxu1 %v1729_v57  ;;  %v2231_v22 = vld [vmem:[#allocation2 + $0x84] sm:$0xf0]  ;;  %v1768_v23 = vld [vmem:[#allocation2 + $0x100] sm:$0xf]  ;;  %v1841_v24 = vor.u32 %v2265_v15, %v1840_v14  ;;  %v1952_v28 = vld [vmem:[#allocation2 + $0x270] sm:$0xf] }
  0x1b   :  { %1227 = vmatpush.bf16.msra.mxu2 %v1793_v58  ;;  %v2247_v25 = vld [vmem:[#allocation2 + $0x104] sm:$0xf0]  ;;  %v1832_v26 = vld [vmem:[#allocation2 + $0x180] sm:$0xf]  ;;  %v2293_v29 = vld [vmem:[#allocation2 + $0x274] sm:$0xf0]  ;;  %v1705_v35 = vor.u32 %v2231_v22, %v1704_v21 }
  0x1c   :  { %1241 = vmatpush.bf16.msra.mxu3 %v1857_v62  ;;  %v2263_v27 = vld [vmem:[#allocation2 + $0x184] sm:$0xf0]  ;;  %v2016_v30 = vld [vmem:[#allocation2 + $0x2f0] sm:$0xf]  ;;  %v2309_v32 = vld [vmem:[#allocation2 + $0x2f4] sm:$0xf0]  ;;  %v1769_v36 = vor.u32 %v2247_v25, %v1768_v23  ;;  %v1953_v40 = vor.u32 %v2293_v29, %v1952_v28 }
  0x1d   :  { %1200 = vmatpush.bf16.msra.mxu0 %v1657_v4  ;;  %v2080_v33 = vld [vmem:[#allocation2 + $0x370] sm:$0xf]  ;;  %v2325_v34 = vld [vmem:[#allocation2 + $0x374] sm:$0xf0]  ;;  %v1833_v39 = vor.u32 %v2263_v27, %v1832_v26  ;;  %v1944_v41 = vld [vmem:[#allocation2 + $0x260] sm:$0xf]  ;;  %v2017_v42 = vor.u32 %v2309_v32, %v2016_v30 }
  0x1e   :  { %1214 = vmatpush.bf16.msra.mxu1 %v1721_v5  ;;  %v2144_v37 = vld [vmem:[#allocation2 + $0x3f0] sm:$0xf]  ;;  %v2341_v38 = vld [vmem:[#allocation2 + $0x3f4] sm:$0xf0]  ;;  %v2081_v43 = vor.u32 %v2325_v34, %v2080_v33  ;;  %v2291_v44 = vld [vmem:[#allocation2 + $0x264] sm:$0xf0] }
  0x1f   :  { %1228 = vmatpush.bf16.msra.mxu2 %v1785_v6  ;;  %v2008_v45 = vld [vmem:[#allocation2 + $0x2e0] sm:$0xf]  ;;  %v2307_v46 = vld [vmem:[#allocation2 + $0x2e4] sm:$0xf0]  ;;  %v2145_v47 = vor.u32 %v2341_v38, %v2144_v37  ;;  %v2495_v52 = vld [vmem:[#allocation2 + $0x250] sm:$0xf]  ;;  %v1945_v54 = vor.u32 %v2291_v44, %v1944_v41 }
  0x20   :  { %1242 = vmatpush.bf16.msra.mxu3 %v1849_v10  ;;  %v2072_v48 = vld [vmem:[#allocation2 + $0x360] sm:$0xf]  ;;  %v2323_v49 = vld [vmem:[#allocation2 + $0x364] sm:$0xf0]  ;;  %v2497_v53 = vld [vmem:[#allocation2 + $0x254] sm:$0xf0]  ;;  %v2009_v58 = vor.u32 %v2307_v46, %v2008_v45 }
  0x21   :  { %1201 = vmatpush.bf16.msra.mxu0 %v1649_v16  ;;  %v2136_v50 = vld [vmem:[#allocation2 + $0x3e0] sm:$0xf]  ;;  %v2339_v51 = vld [vmem:[#allocation2 + $0x3e4] sm:$0xf0]  ;;  %v2499_v55 = vld [vmem:[#allocation2 + $0x2d0] sm:$0xf]  ;;  %v2073_v59 = vor.u32 %v2323_v49, %v2072_v48  ;;  %v1937_v16 = vor.u32 %v2497_v53, %v2495_v52 }
  0x22   :  { %1215 = vmatpush.bf16.msra.mxu1 %v1713_v19  ;;  %v2501_v56 = vld [vmem:[#allocation2 + $0x2d4] sm:$0xf0]  ;;  %v2503_v57 = vld [vmem:[#allocation2 + $0x350] sm:$0xf]  ;;  %v2137_v63 = vor.u32 %v2339_v51, %v2136_v50  ;;  %v2509_v0 = vld [vmem:[#allocation2 + $0x240] sm:$0xf] }
  0x23   :  { %1229 = vmatpush.bf16.msra.mxu2 %v1777_v20  ;;  %v2321_v60 = vld [vmem:[#allocation2 + $0x354] sm:$0xf0]  ;;  %v2505_v61 = vld [vmem:[#allocation2 + $0x3d0] sm:$0xf]  ;;  %v2511_v1 = vld [vmem:[#allocation2 + $0x244] sm:$0xf0]  ;;  %v2001_v23 = vor.u32 %v2501_v56, %v2499_v55 }
  0x24   :  { %1243 = vmatpush.bf16.msra.mxu3 %v1841_v24  ;;  %v2507_v62 = vld [vmem:[#allocation2 + $0x3d4] sm:$0xf0]  ;;  %v2513_v2 = vld [vmem:[#allocation2 + $0x2c0] sm:$0xf]  ;;  %v2515_v3 = vld [vmem:[#allocation2 + $0x2c4] sm:$0xf0]  ;;  %v2065_v24 = vor.u32 %v2321_v60, %v2503_v57 }
  0x25   :  { %1202 = vmatpush.bf16.msra.mxu0 %v1641_v31  ;;  %v2517_v4 = vld [vmem:[#allocation2 + $0x340] sm:$0xf]  ;;  %v2519_v5 = vld [vmem:[#allocation2 + $0x344] sm:$0xf0]  ;;  %v2525_v8 = vld [vmem:[#allocation2 + $0x230] sm:$0xf]  ;;  %v2129_v32 = vor.u32 %v2507_v62, %v2505_v61  ;;  %v1993_v37 = vor.u32 %v2515_v3, %v2513_v2 }
  0x26   :  { %1216 = vmatpush.bf16.msra.mxu1 %v1705_v35  ;;  %v2521_v6 = vld [vmem:[#allocation2 + $0x3c0] sm:$0xf]  ;;  %v2523_v7 = vld [vmem:[#allocation2 + $0x3c4] sm:$0xf0]  ;;  %v2527_v9 = vld [vmem:[#allocation2 + $0x234] sm:$0xf0]  ;;  %v2057_v38 = vor.u32 %v2519_v5, %v2517_v4 }
  0x27   :  { %1230 = vmatpush.bf16.msra.mxu2 %v1769_v36  ;;  %v2529_v10 = vld [vmem:[#allocation2 + $0x2b0] sm:$0xf]  ;;  %v2531_v11 = vld [vmem:[#allocation2 + $0x2b4] sm:$0xf0]  ;;  %v2543_v17 = vld [vmem:[#allocation2 + $0x220] sm:$0xf]  ;;  %v1929_v36 = vor.u32 %v2511_v1, %v2509_v0 }
  0x28   :  { %1244 = vmatpush.bf16.msra.mxu3 %v1833_v39  ;;  %v2533_v12 = vld [vmem:[#allocation2 + $0x330] sm:$0xf]  ;;  %v2535_v13 = vld [vmem:[#allocation2 + $0x334] sm:$0xf0]  ;;  %v2545_v18 = vld [vmem:[#allocation2 + $0x224] sm:$0xf0]  ;;  %v2121_v39 = vor.u32 %v2523_v7, %v2521_v6  ;;  %v1985_v44 = vor.u32 %v2531_v11, %v2529_v10 }
  0x29   :  { %1251 = vmatpush.bf16.msrb.mxu0 %v1953_v40  ;;  %v2537_v14 = vld [vmem:[#allocation2 + $0x3b0] sm:$0xf]  ;;  %v2539_v15 = vld [vmem:[#allocation2 + $0x3b4] sm:$0xf0]  ;;  %v2547_v19 = vld [vmem:[#allocation2 + $0x2a0] sm:$0xf]  ;;  %v2049_v45 = vor.u32 %v2535_v13, %v2533_v12  ;;  %v1913_v50 = vor.u32 %v2545_v18, %v2543_v17 }
  0x2a   :  { %1265 = vmatpush.bf16.msrb.mxu1 %v2017_v42  ;;  %v2549_v20 = vld [vmem:[#allocation2 + $0x2a4] sm:$0xf0]  ;;  %v2551_v21 = vld [vmem:[#allocation2 + $0x320] sm:$0xf]  ;;  %v2562_v27 = vld [vmem:[#allocation2 + $0x210] sm:$0xf]  ;;  %v2113_v46 = vor.u32 %v2539_v15, %v2537_v14 }
  0x2b   :  { %1279 = vmatpush.bf16.msrb.mxu2 %v2081_v43  ;;  %v2553_v22 = vld [vmem:[#allocation2 + $0x324] sm:$0xf0]  ;;  %v2558_v25 = vld [vmem:[#allocation2 + $0x3a0] sm:$0xf]  ;;  %v2564_v28 = vld [vmem:[#allocation2 + $0x214] sm:$0xf0]  ;;  %v1921_v43 = vor.u32 %v2527_v9, %v2525_v8  ;;  %v1977_v51 = vor.u32 %v2549_v20, %v2547_v19 }
  0x2c   :  { %1293 = vmatpush.bf16.msrb.mxu3 %v2145_v47  ;;  %v2560_v26 = vld [vmem:[#allocation2 + $0x3a4] sm:$0xf0]  ;;  %v2566_v29 = vld [vmem:[#allocation2 + $0x290] sm:$0xf]  ;;  %v2568_v30 = vld [vmem:[#allocation2 + $0x294] sm:$0xf0]  ;;  %v2041_v52 = vor.u32 %v2553_v22, %v2551_v21  ;;  %v1905_v57 = vor.u32 %v2564_v28, %v2562_v27 }
  0x2d   :  { %1252 = vmatpush.bf16.msrb.mxu0 %v1945_v54  ;;  %v2570_v31 = vld [vmem:[#allocation2 + $0x310] sm:$0xf]  ;;  %v2574_v33 = vld [vmem:[#allocation2 + $0x314] sm:$0xf0]  ;;  %v2588_v40 = vld [vmem:[#allocation2 + $0x200] sm:$0xf]  ;;  %v2105_v56 = vor.u32 %v2560_v26, %v2558_v25 }
  0x2e   :  { %1266 = vmatpush.bf16.msrb.mxu1 %v2009_v58  ;;  %v2576_v34 = vld [vmem:[#allocation2 + $0x390] sm:$0xf]  ;;  %v2578_v35 = vld [vmem:[#allocation2 + $0x394] sm:$0xf0]  ;;  %v2590_v41 = vld [vmem:[#allocation2 + $0x204] sm:$0xf0]  ;;  %v1969_v58 = vor.u32 %v2568_v30, %v2566_v29 }
  0x2f   :  { %1280 = vmatpush.bf16.msrb.mxu2 %v2073_v59  ;;  %v2592_v42 = vld [vmem:[#allocation2 + $0x280] sm:$0xf]  ;;  %v2602_v47 = vld [vmem:[#allocation2 + $0x284] sm:$0xf0]  ;;  %v2033_v59 = vor.u32 %v2574_v33, %v2570_v31  ;;  %v1897_v0 = vor.u32 %v2590_v41, %v2588_v40  ;;  %v39_v3 = vld [vmem:[%s2982_s0 + $0x10] sm:$0xff]  ;;  %s2458_s14 = smov [#allocation5]  }
  0x30   :  { %1294 = vmatpush.bf16.msrb.mxu3 %v2137_v63  ;;  %v2604_v48 = vld [vmem:[#allocation2 + $0x300] sm:$0xf]  ;;  %v2606_v49 = vld [vmem:[#allocation2 + $0x304] sm:$0xf0]  ;;  %v2097_v63 = vor.u32 %v2578_v35, %v2576_v34  ;;  %v40_v4 = vld [vmem:[%s2982_s0 + $0x18] sm:$0xff]  ;;  %v2988_v34 = vor.u32 %v2602_v47, %v2592_v42  ;;  %s1623_s15 = sshll.u32 %s2458_s14, 4  ;;  %s1624_s15 = int_to_ptr.vmem [resolvable:$true] %s1623_s15 }
  0x31   :  { %1253 = vmatpush.bf16.msrb.mxu0 %v1937_v16  ;;  %v2614_v53 = vld [vmem:[#allocation2 + $0x380] sm:$0xf]  ;;  %v2616_v54 = vld [vmem:[#allocation2 + $0x384] sm:$0xf0]  ;;  %v47_v5 = vld [vmem:[%s2982_s0 + $0x50] sm:$0xff]  ;;  %v54_v10 = vpack.c.bf16 %v40_v4, %v39_v3  ;;  %v2989_v35 = vor.u32 %v2606_v49, %v2604_v48  ;;  %s1625_s18 = sshll.u32 %s2987_s5, 4  ;;  %s1626_s18 = int_to_ptr.hbm [resolvable:$true] %s1625_s18 }
  0x32   :  { %1267 = vmatpush.bf16.msrb.mxu1 %v2001_v23  ;;  %v37_v55 = vld [vmem:[%s2982_s0] sm:$0xff]  ;;  %v38_v60 = vld [vmem:[%s2982_s0 + $0x8] sm:$0xff]  ;;  %v48_v9 = vld [vmem:[%s2982_s0 + $0x58] sm:$0xff]  ;;  %v2990_v40 = vor.u32 %v2616_v54, %v2614_v53 }
  0x33   :  { %1281 = vmatpush.bf16.msrb.mxu2 %v2065_v24  ;;  %v45_v61 = vld [vmem:[%s2982_s0 + $0x40] sm:$0xff]  ;;  %v46_v62 = vld [vmem:[%s2982_s0 + $0x48] sm:$0xff]  ;;  %v53_v1 = vpack.c.bf16 %v38_v60, %v37_v55  ;;  %v58_v23 = vpack.c.bf16 %v48_v9, %v47_v5  ;;  %v2674_v24 = vunpack.c.l.bf16 %v54_v10 }
  0x34   :  { %1295 = vmatpush.bf16.msrb.mxu3 %v2129_v32  ;;  %v57_v2 = vpack.c.bf16 %v46_v62, %v45_v61  ;;  %v41_v11 = vld [vmem:[%s2982_s0 + $0x20] sm:$0xff]  ;;  %v42_v12 = vld [vmem:[%s2982_s0 + $0x28] sm:$0xff]  ;;  %v2676_v32 = vunpack.c.h.bf16 %v54_v10 }
  0x35   :  { %1254 = vmatpush.bf16.msrb.mxu0 %v1929_v36  ;;  %v2666_v13 = vunpack.c.l.bf16 %v53_v1  ;;  %v2668_v14 = vunpack.c.h.bf16 %v53_v1  ;;  %v49_v36 = vld [vmem:[%s2982_s0 + $0x60] sm:$0xff]  ;;  %v2692_v62 = vunpack.c.l.bf16 %v58_v23  ;;  %v2694_v1 = vunpack.c.h.bf16 %v58_v23 }
  0x36   :  { %1268 = vmatpush.bf16.msrb.mxu1 %v1993_v37  ;;  %v2670_v15 = vunpack.c.l.bf16 %v57_v2  ;;  %v2672_v16 = vunpack.c.h.bf16 %v57_v2  ;;  %v50_v37 = vld [vmem:[%s2982_s0 + $0x68] sm:$0xff]  ;;  %v79_v2 = vmul.f32 %v2674_v24, %v2674_v24  ;;  %v80_v3 = vmul.f32 %v2676_v32, %v2676_v32 }
  0x37   :  { %1282 = vmatpush.bf16.msrb.mxu2 %v2057_v38  ;;  %v55_v38 = vpack.c.bf16 %v42_v12, %v41_v11  ;;  %v77_v55 = vmul.f32 %v2666_v13, %v2666_v13  ;;  %v59_v9 = vpack.c.bf16 %v50_v37, %v49_v36  ;;  %v88_v11 = vmul.f32 %v2694_v1, %v2694_v1 }
  0x38   :  { %1296 = vmatpush.bf16.msrb.mxu3 %v2121_v39  ;;  %v78_v39 = vmul.f32 %v2668_v14, %v2668_v14  ;;  %v85_v60 = vmul.f32 %v2670_v15, %v2670_v15  ;;  %v86_v61 = vmul.f32 %v2672_v16, %v2672_v16  ;;  %v94_v12 = vpack.c.bf16 %v80_v3, %v79_v2 }
  0x39   :  { %1255 = vmatpush.bf16.msrb.mxu0 %v1921_v43  ;;  %v2700_v10 = vunpack.c.l.bf16 %v55_v38  ;;  %v87_v43 = vmul.f32 %v2692_v62, %v2692_v62  ;;  %v2706_v23 = vunpack.c.h.bf16 %v55_v38  ;;  %v2711_v37 = vunpack.c.l.bf16 %v59_v9 }
  0x3a   :  { %1269 = vmatpush.bf16.msrb.mxu1 %v1985_v44  ;;  %v93_v4 = vpack.c.bf16 %v78_v39, %v77_v55  ;;  %v97_v5 = vpack.c.bf16 %v86_v61, %v85_v60  ;;  %v103_v36 = vunpack.c.l.bf16 %v94_v12  ;;  %v2722_v18 = vunpack.c.h.bf16 %v59_v9 }
  0x3b   :  { %1283 = vmatpush.bf16.msrb.mxu2 %v2049_v45  ;;  %v98_v45 = vpack.c.bf16 %v88_v11, %v87_v43 }
  0x3c   :  { %1297 = vmatpush.bf16.msrb.mxu3 %v2113_v46  ;;  %v101_v8 = vunpack.c.l.bf16 %v93_v4  ;;  %v102_v7 = vunpack.c.h.bf16 %v93_v4  ;;  %v109_v6 = vunpack.c.l.bf16 %v97_v5  ;;  %v110_v44 = vunpack.c.h.bf16 %v97_v5 }
  0x3d   :  { %1256 = vmatpush.bf16.msrb.mxu0 %v1913_v50  ;;  %v104_v46 = vunpack.c.h.bf16 %v94_v12  ;;  %v111_v19 = vunpack.c.l.bf16 %v98_v45  ;;  %v112_v20 = vunpack.c.h.bf16 %v98_v45  ;;  %v90_v28 = vmul.f32 %v2722_v18, %v2722_v18 }
  0x3e   :  { %1270 = vmatpush.bf16.msrb.mxu1 %v1977_v51  ;;  %v117_v38 = vmul.f32 %v101_v8, %v2666_v13  ;;  %v118_v55 = vmul.f32 %v102_v7, %v2668_v14  ;;  %v125_v17 = vmul.f32 %v109_v6, %v2670_v15  ;;  %v126_v50 = vmul.f32 %v110_v44, %v2672_v16 }
  0x3f   :  { %1284 = vmatpush.bf16.msrb.mxu2 %v2041_v52  ;;  %v119_v51 = vmul.f32 %v103_v36, %v2674_v24  ;;  %v120_v22 = vmul.f32 %v104_v46, %v2676_v32  ;;  %v81_v52 = vmul.f32 %v2700_v10, %v2700_v10  ;;  %v82_v6 = vmul.f32 %v2706_v23, %v2706_v23 }
  0x40   :  { %1298 = vmatpush.bf16.msrb.mxu3 %v2105_v56  ;;  %v133_v21 = vpack.c.bf16 %v118_v55, %v117_v38  ;;  %v137_v25 = vpack.c.bf16 %v126_v50, %v125_v17  ;;  %v127_v26 = vmul.f32 %v111_v19, %v2692_v62  ;;  %v128_v56 = vmul.f32 %v112_v20, %v2694_v1 }
  0x41   :  { %1257 = vmatpush.bf16.msrb.mxu0 %v1905_v57  ;;  %v89_v7 = vmul.f32 %v2711_v37, %v2711_v37  ;;  %v134_v27 = vpack.c.bf16 %v120_v22, %v119_v51  ;;  %v95_v2 = vpack.c.bf16 %v82_v6, %v81_v52 }
  0x42   :  { %1271 = vmatpush.bf16.msrb.mxu1 %v1969_v58  ;;  %v141_v8 = vunpack.c.l.bf16 %v133_v21  ;;  %v142_v39 = vunpack.c.h.bf16 %v133_v21  ;;  %v149_v57 = vunpack.c.l.bf16 %v137_v25  ;;  %v150_v60 = vunpack.c.h.bf16 %v137_v25 }
  0x43   :  { %1285 = vmatpush.bf16.msrb.mxu2 %v2033_v59  ;;  %v138_v61 = vpack.c.bf16 %v128_v56, %v127_v26  ;;  %v143_v58 = vunpack.c.l.bf16 %v134_v27  ;;  %v144_v3 = vunpack.c.h.bf16 %v134_v27  ;;  %v99_v43 = vpack.c.bf16 %v90_v28, %v89_v7 }
  0x44   :  { %1299 = vmatpush.bf16.msrb.mxu3 %v2097_v63  ;;  %v157_v29 = vmul.f32 0.044677734, %v141_v8  ;;  %v158_v30 = vmul.f32 0.044677734, %v142_v39  ;;  %v165_v31 = vmul.f32 0.044677734, %v149_v57  ;;  %v166_v33 = vmul.f32 0.044677734, %v150_v60 }
  0x45   :  { %1258 = vmatpush.bf16.msrb.mxu0 %v1897_v0  ;;  %v151_v59 = vunpack.c.l.bf16 %v138_v61  ;;  %v152_v4 = vunpack.c.h.bf16 %v138_v61  ;;  %v159_v5 = vmul.f32 0.044677734, %v143_v58  ;;  %v160_v9 = vmul.f32 0.044677734, %v144_v3 }
  0x46   :  { %1272 = vmatpush.bf16.msrb.mxu1 %v2988_v34  ;;  %v173_v63 = vpack.c.bf16 %v158_v30, %v157_v29  ;;  %v177_v41 = vpack.c.bf16 %v166_v33, %v165_v31  ;;  %v105_v12 = vunpack.c.l.bf16 %v95_v2  ;;  %v106_v47 = vunpack.c.h.bf16 %v95_v2 }
  0x47   :  { %1286 = vmatpush.bf16.msrb.mxu2 %v2989_v35  ;;  %v167_v0 = vmul.f32 0.044677734, %v151_v59  ;;  %v168_v11 = vmul.f32 0.044677734, %v152_v4  ;;  %v174_v42 = vpack.c.bf16 %v160_v9, %v159_v5  ;;  %v113_v49 = vunpack.c.l.bf16 %v99_v43 }
  0x48   :  { %1300 = vmatpush.bf16.msrb.mxu3 %v2990_v40  ;;  %v181_v44 = vunpack.c.l.bf16 %v173_v63  ;;  %v182_v45 = vunpack.c.h.bf16 %v173_v63  ;;  %v189_v36 = vunpack.c.l.bf16 %v177_v41  ;;  %v190_v46 = vunpack.c.h.bf16 %v177_v41 }
  0x49   :  { %v178_v48 = vpack.c.bf16 %v168_v11, %v167_v0  ;;  %v183_v17 = vunpack.c.l.bf16 %v174_v42  ;;  %v184_v50 = vunpack.c.h.bf16 %v174_v42  ;;  %v114_v52 = vunpack.c.h.bf16 %v99_v43 }
  0x4a   :  { %v197_v38 = vadd.f32 %v181_v44, %v2666_v13  ;;  %v198_v55 = vadd.f32 %v182_v45, %v2668_v14  ;;  %v205_v53 = vadd.f32 %v189_v36, %v2670_v15  ;;  %v206_v54 = vadd.f32 %v190_v46, %v2672_v16 }
  0x4b   :  { %v191_v19 = vunpack.c.l.bf16 %v178_v48  ;;  %v192_v20 = vunpack.c.h.bf16 %v178_v48  ;;  %v199_v21 = vadd.f32 %v183_v17, %v2674_v24  ;;  %v200_v22 = vadd.f32 %v184_v50, %v2676_v32  ;;  %v2779_v50 = vld [vmem:[#allocation2 + $0x74] sm:$0xf] }
  0x4c   :  { %v213_v51 = vpack.c.bf16 %v198_v55, %v197_v38  ;;  %v217_v6 = vpack.c.bf16 %v206_v54, %v205_v53  ;;  %v121_v56 = vmul.f32 %v105_v12, %v2700_v10  ;;  %v122_v27 = vmul.f32 %v106_v47, %v2706_v23  ;;  %v43_v55 = vld [vmem:[%s2982_s0 + $0x30] sm:$0xff]  ;;  %v2781_v53 = vld [vmem:[#allocation2 + $0x78] sm:$0xf0] }
  0x4d   :  { %v207_v25 = vadd.f32 %v191_v19, %v2692_v62  ;;  %v208_v26 = vadd.f32 %v192_v20, %v2694_v1  ;;  %v214_v39 = vpack.c.bf16 %v200_v22, %v199_v21  ;;  %v129_v61 = vmul.f32 %v113_v49, %v2711_v37  ;;  %v2783_v54 = vld [vmem:[#allocation2 + $0xf4] sm:$0xf]  ;;  %v2788_v21 = vld [vmem:[#allocation2 + $0xf8] sm:$0xf0] }
  0x4e   :  { %v221_v7 = vunpack.c.l.bf16 %v213_v51  ;;  %v222_v8 = vunpack.c.h.bf16 %v213_v51  ;;  %v229_v28 = vunpack.c.l.bf16 %v217_v6  ;;  %v230_v57 = vunpack.c.h.bf16 %v217_v6  ;;  %v44_v51 = vld [vmem:[%s2982_s0 + $0x38] sm:$0xff]  ;;  %v2790_v22 = vld [vmem:[#allocation2 + $0x174] sm:$0xf] }
  0x4f   :  { %v218_v60 = vpack.c.bf16 %v208_v26, %v207_v25  ;;  %v223_v30 = vunpack.c.l.bf16 %v214_v39  ;;  %v224_v58 = vunpack.c.h.bf16 %v214_v39  ;;  %v130_v63 = vmul.f32 %v114_v52, %v2722_v18  ;;  %v51_v6 = vld [vmem:[%s2982_s0 + $0x70] sm:$0xff]  ;;  %v2795_v25 = vld [vmem:[#allocation2 + $0x178] sm:$0xf0] }
  0x50   :  { %v237_v2 = vmul.f32 0.796875, %v221_v7  ;;  %v238_v29 = vmul.f32 0.796875, %v222_v8  ;;  %v245_v3 = vmul.f32 0.796875, %v229_v28  ;;  %v246_v31 = vmul.f32 0.796875, %v230_v57  ;;  %v2797_v26 = vld [vmem:[#allocation2 + $0x1f4] sm:$0xf] }
  0x51   :  { %v231_v33 = vunpack.c.l.bf16 %v218_v60  ;;  %v232_v59 = vunpack.c.h.bf16 %v218_v60  ;;  %v239_v34 = vmul.f32 0.796875, %v223_v30  ;;  %v240_v35 = vmul.f32 0.796875, %v224_v58  ;;  %v52_v7 = vld [vmem:[%s2982_s0 + $0x78] sm:$0xff]  ;;  %v2806_v28 = vld [vmem:[#allocation2 + $0x68] sm:$0xf0] }
  0x52   :  { %v253_v4 = vpack.c.bf16 %v238_v29, %v237_v2  ;;  %v257_v5 = vpack.c.bf16 %v246_v31, %v245_v3  ;;  %v135_v40 = vpack.c.bf16 %v122_v27, %v121_v56  ;;  %v139_v12 = vpack.c.bf16 %v130_v63, %v129_v61  ;;  %v2802_v39 = vld [vmem:[#allocation2 + $0x1f8] sm:$0xf0]  ;;  %v2804_v27 = vld [vmem:[#allocation2 + $0x64] sm:$0xf]  ;;  %v2810_v61 = vld [vmem:[#allocation2 + $0xe8] sm:$0xf0] }
  0x53   :  { %v247_v9 = vmul.f32 0.796875, %v231_v33  ;;  %v248_v43 = vmul.f32 0.796875, %v232_v59  ;;  %v254_v11 = vpack.c.bf16 %v240_v35, %v239_v34  ;;  %v2808_v60 = vld [vmem:[#allocation2 + $0xe4] sm:$0xf]  ;;  %v56_v30 = vpack.c.bf16 %v44_v51, %v43_v55 }
  0x54   :  { %v261_v41 = vunpack.c.l.bf16 %v253_v4  ;;  %v262_v0 = vunpack.c.h.bf16 %v253_v4  ;;  %v269_v44 = vunpack.c.l.bf16 %v257_v5  ;;  %v270_v45 = vunpack.c.h.bf16 %v257_v5 }
  0x55   :  { %v258_v42 = vpack.c.bf16 %v248_v43, %v247_v9  ;;  %v145_v47 = vunpack.c.l.bf16 %v135_v40  ;;  %v263_v36 = vunpack.c.l.bf16 %v254_v11  ;;  %v146_v46 = vunpack.c.h.bf16 %v135_v40 }
  0x56   :  { %2363 = vtanh.f32 %v261_v41  ;;  %v264_v48 = vunpack.c.h.bf16 %v254_v11  ;;  %v153_v38 = vunpack.c.l.bf16 %v139_v12  ;;  %v154_v19 = vunpack.c.h.bf16 %v139_v12 }
  0x57   :  { %2365 = vtanh.f32 %v262_v0  ;;  %v271_v49 = vunpack.c.l.bf16 %v258_v42  ;;  %v272_v17 = vunpack.c.h.bf16 %v258_v42  ;;  %v161_v20 = vmul.f32 0.044677734, %v145_v47 }
  0x58   :  { %2367 = vtanh.f32 %v269_v44  ;;  %v162_v52 = vmul.f32 0.044677734, %v146_v46  ;;  %v169_v56 = vmul.f32 0.044677734, %v153_v38  ;;  %v170_v2 = vmul.f32 0.044677734, %v154_v19 }
  0x59   :  { %2369 = vtanh.f32 %v270_v45  ;;  %v1701_v31 = vor.u32 %v2779_v50, %v2781_v53  ;;  %v1765_v33 = vor.u32 %v2783_v54, %v2788_v21  ;;  %v1829_v59 = vor.u32 %v2790_v22, %v2795_v25  ;;  %v1682_v54 = vld [vmem:[#allocation2 + $0x58] sm:$0xf0]  ;;  %v2240_v21 = vld [vmem:[#allocation2 + $0xd4] sm:$0xf] }
  0x5a   :  { %2371 = vtanh.f32 %v263_v36  ;;  %v175_v29 = vpack.c.bf16 %v162_v52, %v161_v20  ;;  %v1893_v34 = vor.u32 %v2797_v26, %v2802_v39  ;;  %v1693_v35 = vor.u32 %v2804_v27, %v2806_v28  ;;  %v2272_v22 = vld [vmem:[#allocation2 + $0x1d4] sm:$0xf]  ;;  %v1874_v25 = vld [vmem:[#allocation2 + $0x1d8] sm:$0xf0] }
  0x5b   :  { %2373 = vtanh.f32 %v264_v48  ;;  %v179_v63 = vpack.c.bf16 %v170_v2, %v169_v56  ;;  %v60_v5 = vpack.c.bf16 %v52_v7, %v51_v6  ;;  %v1757_v0 = vor.u32 %v2808_v60, %v2810_v61 }
  0x5c   :  { %v2364_v8 = vpop.eup %2363  ;;  %2375 = vtanh.f32 %v271_v49  ;;  %v185_v12 = vunpack.c.l.bf16 %v175_v29  ;;  %v186_v44 = vunpack.c.h.bf16 %v175_v29  ;;  %v2824_v45 = vunpack.c.l.bf16 %v56_v30 }
  0x5d   :  { %v2366_v57 = vpop.eup %2365  ;;  %2377 = vtanh.f32 %v272_v17  ;;  %v2826_v42 = vunpack.c.h.bf16 %v56_v30  ;;  %v193_v17 = vunpack.c.l.bf16 %v179_v63  ;;  %v2828_v19 = vunpack.c.l.bf16 %v60_v5 }
  0x5e   :  { %v2368_v58 = vpop.eup %2367  ;;  %v293_v3 = vpack.c.bf16 %v2366_v57, %v2364_v8  ;;  %v2830_v20 = vunpack.c.h.bf16 %v60_v5  ;;  %v194_v57 = vunpack.c.h.bf16 %v179_v63  ;;  %v201_v2 = vadd.f32 %v185_v12, %v2700_v10 }
  0x5f   :  { %v2370_v4 = vpop.eup %2369  ;;  %v209_v63 = vadd.f32 %v193_v17, %v2711_v37 }
  0x60   :  { %v2372_v9 = vpop.eup %2371  ;;  %v297_v43 = vpack.c.bf16 %v2370_v4, %v2368_v58  ;;  %v301_v40 = vunpack.c.l.bf16 %v293_v3  ;;  %v302_v41 = vunpack.c.h.bf16 %v293_v3 }
  0x61   :  { %v2374_v11 = vpop.eup %2373 }
  0x62   :  { %v2376_v47 = vpop.eup %2375  ;;  %v309_v36 = vunpack.c.l.bf16 %v297_v43  ;;  %v310_v46 = vunpack.c.h.bf16 %v297_v43  ;;  %v317_v48 = vadd.f32 1.0, %v301_v40  ;;  %v318_v49 = vadd.f32 1.0, %v302_v41 }
  0x63   :  { %v2378_v38 = vpop.eup %2377  ;;  %v294_v55 = vpack.c.bf16 %v2374_v11, %v2372_v9  ;;  %v202_v40 = vadd.f32 %v186_v44, %v2706_v23 }
  0x64   :  { %v325_v51 = vadd.f32 1.0, %v309_v36  ;;  %v326_v52 = vadd.f32 1.0, %v310_v46  ;;  %v333_v6 = vpack.c.bf16 %v318_v49, %v317_v48  ;;  %v298_v56 = vpack.c.bf16 %v2378_v38, %v2376_v47 }
  0x65   :  { %v303_v7 = vunpack.c.l.bf16 %v294_v55  ;;  %v304_v8 = vunpack.c.h.bf16 %v294_v55  ;;  %v210_v55 = vadd.f32 %v194_v57, %v2722_v18 }
  0x66   :  { %v337_v29 = vpack.c.bf16 %v326_v52, %v325_v51  ;;  %v341_v30 = vunpack.c.l.bf16 %v333_v6  ;;  %v342_v58 = vunpack.c.h.bf16 %v333_v6  ;;  %v311_v3 = vunpack.c.l.bf16 %v298_v56 }
  0x67   :  { %v312_v4 = vunpack.c.h.bf16 %v298_v56  ;;  %v319_v9 = vadd.f32 1.0, %v303_v7  ;;  %v320_v43 = vadd.f32 1.0, %v304_v8  ;;  %v215_v56 = vpack.c.bf16 %v202_v40, %v201_v2 }
  0x68   :  { %v349_v5 = vunpack.c.l.bf16 %v337_v29  ;;  %v350_v41 = vunpack.c.h.bf16 %v337_v29  ;;  %v357_v11 = vmul.f32 0.5, %v341_v30  ;;  %v358_v36 = vmul.f32 0.5, %v342_v58 }
  0x69   :  { %v327_v46 = vadd.f32 1.0, %v311_v3  ;;  %v328_v47 = vadd.f32 1.0, %v312_v4  ;;  %v334_v48 = vpack.c.bf16 %v320_v43, %v319_v9  ;;  %v219_v29 = vpack.c.bf16 %v210_v55, %v209_v63 }
  0x6a   :  { %v365_v49 = vmul.f32 0.5, %v349_v5  ;;  %v366_v12 = vmul.f32 0.5, %v350_v41  ;;  %v373_v38 = vpack.c.bf16 %v358_v36, %v357_v11  ;;  %v225_v36 = vunpack.c.l.bf16 %v215_v56 }
  0x6b   :  { %v338_v51 = vpack.c.bf16 %v328_v47, %v327_v46  ;;  %v343_v52 = vunpack.c.l.bf16 %v334_v48  ;;  %v344_v6 = vunpack.c.h.bf16 %v334_v48  ;;  %v226_v46 = vunpack.c.h.bf16 %v215_v56 }
  0x6c   :  { %v377_v7 = vpack.c.bf16 %v366_v12, %v365_v49  ;;  %v381_v44 = vunpack.c.l.bf16 %v373_v38  ;;  %v382_v8 = vunpack.c.h.bf16 %v373_v38  ;;  %v233_v47 = vunpack.c.l.bf16 %v219_v29 }
  0x6d   :  { %v351_v30 = vunpack.c.l.bf16 %v338_v51  ;;  %v352_v58 = vunpack.c.h.bf16 %v338_v51  ;;  %v359_v3 = vmul.f32 0.5, %v343_v52  ;;  %v360_v4 = vmul.f32 0.5, %v344_v6 }
  0x6e   :  { %v389_v9 = vunpack.c.l.bf16 %v377_v7  ;;  %v397_v17 = vmul.f32 %v381_v44, %v2666_v13  ;;  %v390_v43 = vunpack.c.h.bf16 %v377_v7  ;;  %v398_v5 = vmul.f32 %v382_v8, %v2668_v14 }
  0x6f   :  { %v367_v41 = vmul.f32 0.5, %v351_v30  ;;  %v368_v57 = vmul.f32 0.5, %v352_v58  ;;  %v374_v11 = vpack.c.bf16 %v360_v4, %v359_v3  ;;  %v234_v12 = vunpack.c.h.bf16 %v219_v29  ;;  %v2274_v58 = vld [vmem:[#allocation2 + $0x1e4] sm:$0xf]  ;;  %v1882_v3 = vld [vmem:[#allocation2 + $0x1e8] sm:$0xf0] }
  0x70   :  { %v405_v2 = vmul.f32 %v389_v9, %v2670_v15  ;;  %v406_v40 = vmul.f32 %v390_v43, %v2672_v16  ;;  %v241_v55 = vmul.f32 0.796875, %v225_v36  ;;  %v242_v14 = vmul.f32 0.796875, %v226_v46  ;;  %v2224_v4 = vld [vmem:[#allocation2 + $0x54] sm:$0xf] }
  0x71   :  { %v378_v48 = vpack.c.bf16 %v368_v57, %v367_v41  ;;  %v383_v63 = vunpack.c.l.bf16 %v374_v11  ;;  %v384_v49 = vunpack.c.h.bf16 %v374_v11  ;;  %v249_v16 = vmul.f32 0.796875, %v233_v47 }
  0x72   :  { %v2840_v38 = vpack.c.bf16 %v405_v2, %v397_v17  ;;  %v2842_v13 = vpack.c.bf16 %v406_v40, %v398_v5  ;;  %v250_v56 = vmul.f32 0.796875, %v234_v12  ;;  %v255_v7 = vpack.c.bf16 %v242_v14, %v241_v55  ;;  %v2238_v12 = vld [vmem:[#allocation2 + $0xc4] sm:$0xf]  ;;  %v1738_v55 = vld [vmem:[#allocation2 + $0xc8] sm:$0xf0] }
  0x73   :  { %v391_v51 = vunpack.c.l.bf16 %v378_v48  ;;  %v399_v52 = vmul.f32 %v383_v63, %v2674_v24  ;;  %v392_v6 = vunpack.c.h.bf16 %v378_v48  ;;  %v400_v15 = vmul.f32 %v384_v49, %v2676_v32  ;;  %v2258_v24 = vld [vmem:[#allocation2 + $0x164] sm:$0xf]  ;;  %v1818_v32 = vld [vmem:[#allocation2 + $0x168] sm:$0xf0]  ;;  %v2256_v48 = vld [vmem:[#allocation2 + $0x154] sm:$0xf] }
  0x74   :  { %1203 = vmatmul.bf16.vlgmr.msra.gmra.mxu0 %v2840_v38  ;;  %1217 = vmatmul.bf16.vlgmr.msra.gmra.mxu1 %v2842_v13  ;;  %v83_v44 = vmul.f32 %v2824_v45, %v2824_v45  ;;  %v84_v30 = vmul.f32 %v2826_v42, %v2826_v42  ;;  %v259_v9 = vpack.c.bf16 %v250_v56, %v249_v16  ;;  %v266_v17 = vunpack.c.h.bf16 %v255_v7  ;;  %v1810_v63 = vld [vmem:[#allocation2 + $0x158] sm:$0xf0]  ;;  %v1674_v49 = vld [vmem:[#allocation2 + $0x48] sm:$0xf0] }
  0x75   :  { %v407_v8 = vmul.f32 %v391_v51, %v2692_v62  ;;  %v408_v29 = vmul.f32 %v392_v6, %v2694_v1  ;;  %1307 = vmatpush.bf16.msra.mxu0 %v1701_v31  ;;  %1321 = vmatpush.bf16.msra.mxu1 %v1765_v33  ;;  %v265_v62 = vunpack.c.l.bf16 %v255_v7  ;;  %v91_v1 = vmul.f32 %v2828_v19, %v2828_v19  ;;  %v1746_v31 = vld [vmem:[#allocation2 + $0xd8] sm:$0xf0]  ;;  %v2254_v51 = vld [vmem:[#allocation2 + $0x144] sm:$0xf]  ;;  %v1866_v6 = vld [vmem:[#allocation2 + $0x1c8] sm:$0xf0] }
  0x76   :  { %v92_v33 = vmul.f32 %v2830_v20, %v2830_v20  ;;  %v96_v43 = vpack.c.bf16 %v84_v30, %v83_v44  ;;  %v1821_v5 = vor.u32 %v2258_v24, %v1818_v32  ;;  %v273_v41 = vunpack.c.l.bf16 %v259_v9 }
  0x77   :  { %v2862_v50 = vpack.c.bf16 %v407_v8, %v399_v52  ;;  %v2864_v53 = vpack.c.bf16 %v408_v29, %v400_v15  ;;  %v274_v57 = vunpack.c.h.bf16 %v259_v9  ;;  %2379 = vtanh.f32 %v265_v62  ;;  %v2270_v52 = vld [vmem:[#allocation2 + $0x1c4] sm:$0xf] }
  0x78   :  { %2381 = vtanh.f32 %v266_v17  ;;  %v100_v11 = vpack.c.bf16 %v92_v33, %v91_v1  ;;  %v107_v36 = vunpack.c.l.bf16 %v96_v43  ;;  %v108_v2 = vunpack.c.h.bf16 %v96_v43 }
  0x79   :  { %1231 = vmatmul.bf16.vlgmr.msra.gmra.mxu2 %v2862_v50  ;;  %1245 = vmatmul.bf16.vlgmr.msra.gmra.mxu3 %v2864_v53  ;;  %v1885_v40 = vor.u32 %v2274_v58, %v1882_v3  ;;  %v1685_v46 = vor.u32 %v2224_v4, %v1682_v54  ;;  %v1749_v47 = vor.u32 %v2240_v21, %v1746_v31  ;;  %2383 = vtanh.f32 %v273_v41 }
  0x7a   :  { %1335 = vmatpush.bf16.msra.mxu2 %v1829_v59  ;;  %1349 = vmatpush.bf16.msra.mxu3 %v1893_v34  ;;  %v2222_v59 = vld [vmem:[#allocation2 + $0x44] sm:$0xf]  ;;  %2385 = vtanh.f32 %v274_v57  ;;  %v115_v26 = vunpack.c.l.bf16 %v100_v11  ;;  %v116_v39 = vunpack.c.h.bf16 %v100_v11  ;;  %v123_v34 = vmul.f32 %v107_v36, %v2824_v45 }
  0x7b   :  { %1308 = vmatpush.bf16.msra.mxu0 %v1693_v35  ;;  %1322 = vmatpush.bf16.msra.mxu1 %v1757_v0  ;;  %v124_v14 = vmul.f32 %v108_v2, %v2826_v42  ;;  %v1813_v61 = vor.u32 %v2256_v48, %v1810_v63  ;;  %v1877_v35 = vor.u32 %v2272_v22, %v1874_v25  ;;  %v1802_v0 = vld [vmem:[#allocation2 + $0x148] sm:$0xf0] }
  0x7c   :  { %v131_v27 = vmul.f32 %v115_v26, %v2828_v19  ;;  %v132_v28 = vmul.f32 %v116_v39, %v2830_v20  ;;  %v1677_v56 = vor.u32 %v2222_v59, %v1674_v49  ;;  %v1741_v7 = vor.u32 %v2238_v12, %v1738_v55 }
  0x7d   :  { %v2380_v60 = vpop.eup %2379  ;;  %v136_v15 = vpack.c.bf16 %v124_v14, %v123_v34  ;;  %v1805_v58 = vor.u32 %v2254_v51, %v1802_v0  ;;  %v1869_v3 = vor.u32 %v2270_v52, %v1866_v6 }
  0x7e   :  { %1336 = vmatpush.bf16.msra.mxu2 %v1821_v5  ;;  %1350 = vmatpush.bf16.msra.mxu3 %v1885_v40  ;;  %v2382_v16 = vpop.eup %2381  ;;  %v140_v44 = vpack.c.bf16 %v132_v28, %v131_v27 }
  0x7f   :  { %1309 = vmatpush.bf16.msra.mxu0 %v1685_v46  ;;  %1323 = vmatpush.bf16.msra.mxu1 %v1749_v47  ;;  %v2384_v8 = vpop.eup %2383  ;;  %v295_v29 = vpack.c.bf16 %v2382_v16, %v2380_v60  ;;  %v147_v24 = vunpack.c.l.bf16 %v136_v15  ;;  %v148_v32 = vunpack.c.h.bf16 %v136_v15 }
  0x80   :  { %v2386_v30 = vpop.eup %2385  ;;  %v155_v4 = vunpack.c.l.bf16 %v140_v44  ;;  %v156_v9 = vunpack.c.h.bf16 %v140_v44 }
  0x81   :  { %v299_v62 = vpack.c.bf16 %v2386_v30, %v2384_v8  ;;  %v305_v17 = vunpack.c.l.bf16 %v295_v29  ;;  %v306_v1 = vunpack.c.h.bf16 %v295_v29  ;;  %v163_v54 = vmul.f32 0.044677734, %v147_v24 }
  0x82   :  { %1337 = vmatpush.bf16.msra.mxu2 %v1813_v61  ;;  %1351 = vmatpush.bf16.msra.mxu3 %v1877_v35  ;;  %v164_v21 = vmul.f32 0.044677734, %v148_v32  ;;  %v171_v31 = vmul.f32 0.044677734, %v155_v4  ;;  %v172_v33 = vmul.f32 0.044677734, %v156_v9  ;;  %v2236_v4 = vld [vmem:[#allocation2 + $0xb4] sm:$0xf] }
  0x83   :  { %1310 = vmatpush.bf16.msra.mxu0 %v1677_v56  ;;  %1324 = vmatpush.bf16.msra.mxu1 %v1741_v7  ;;  %v313_v43 = vunpack.c.l.bf16 %v299_v62  ;;  %v314_v5 = vunpack.c.h.bf16 %v299_v62  ;;  %v321_v41 = vadd.f32 1.0, %v305_v17  ;;  %v322_v57 = vadd.f32 1.0, %v306_v1 }
  0x84   :  { %v176_v11 = vpack.c.bf16 %v164_v21, %v163_v54  ;;  %v180_v36 = vpack.c.bf16 %v172_v33, %v171_v31  ;;  %v1730_v21 = vld [vmem:[#allocation2 + $0xb8] sm:$0xf0]  ;;  %v2252_v31 = vld [vmem:[#allocation2 + $0x134] sm:$0xf] }
  0x85   :  { %v329_v2 = vadd.f32 1.0, %v313_v43  ;;  %v330_v40 = vadd.f32 1.0, %v314_v5  ;;  %v335_v46 = vpack.c.bf16 %v322_v57, %v321_v41  ;;  %v1794_v33 = vld [vmem:[#allocation2 + $0x138] sm:$0xf0]  ;;  %v1733_v5 = vor.u32 %v2236_v4, %v1730_v21  ;;  %v2268_v57 = vld [vmem:[#allocation2 + $0x1b4] sm:$0xf] }
  0x86   :  { %1338 = vmatpush.bf16.msra.mxu2 %v1805_v58  ;;  %1352 = vmatpush.bf16.msra.mxu3 %v1869_v3  ;;  %v187_v47 = vunpack.c.l.bf16 %v176_v11  ;;  %v188_v48 = vunpack.c.h.bf16 %v176_v11  ;;  %v195_v63 = vunpack.c.l.bf16 %v180_v36  ;;  %v196_v22 = vunpack.c.h.bf16 %v180_v36  ;;  %v2220_v58 = vld [vmem:[#allocation2 + $0x34] sm:$0xf]  ;;  %v1666_v3 = vld [vmem:[#allocation2 + $0x38] sm:$0xf0] }
  0x87   :  { %v339_v25 = vpack.c.bf16 %v330_v40, %v329_v2  ;;  %v345_v59 = vunpack.c.l.bf16 %v335_v46  ;;  %v346_v26 = vunpack.c.h.bf16 %v335_v46  ;;  %v1669_v54 = vor.u32 %v2220_v58, %v1666_v3  ;;  %v1858_v11 = vld [vmem:[#allocation2 + $0x1b8] sm:$0xf0]  ;;  %v2218_v46 = vld [vmem:[#allocation2 + $0x24] sm:$0xf]  ;;  %1325 = vmatpush.bf16.msra.mxu1 %v1733_v5  ;;  %v1834_v58 = vld [vmem:[#allocation2 + $0x188] sm:$0xf0] }
  0x88   :  { %v203_v39 = vadd.f32 %v187_v47, %v2824_v45  ;;  %v204_v34 = vadd.f32 %v188_v48, %v2826_v42  ;;  %v211_v49 = vadd.f32 %v195_v63, %v2828_v19  ;;  %v212_v12 = vadd.f32 %v196_v22, %v2830_v20  ;;  %v1658_v47 = vld [vmem:[#allocation2 + $0x28] sm:$0xf0]  ;;  %v2234_v48 = vld [vmem:[#allocation2 + $0xa4] sm:$0xf] }
  0x89   :  { %v353_v55 = vunpack.c.l.bf16 %v339_v25  ;;  %v354_v14 = vunpack.c.h.bf16 %v339_v25  ;;  %v361_v51 = vmul.f32 0.5, %v345_v59  ;;  %v362_v27 = vmul.f32 0.5, %v346_v26  ;;  %1311 = vmatpush.bf16.msra.mxu0 %v1669_v54  ;;  %v1722_v59 = vld [vmem:[#allocation2 + $0xa8] sm:$0xf0]  ;;  %v2250_v26 = vld [vmem:[#allocation2 + $0x124] sm:$0xf] }
  0x8a   :  { %v216_v28 = vpack.c.bf16 %v204_v34, %v203_v39  ;;  %v220_v60 = vpack.c.bf16 %v212_v12, %v211_v49  ;;  %v1797_v41 = vor.u32 %v2252_v31, %v1794_v33  ;;  %v1861_v25 = vor.u32 %v2268_v57, %v1858_v11  ;;  %v1786_v39 = vld [vmem:[#allocation2 + $0x128] sm:$0xf0]  ;;  %v2266_v12 = vld [vmem:[#allocation2 + $0x1a4] sm:$0xf]  ;;  %v2018_v31 = vld [vmem:[#allocation2 + $0x2f8] sm:$0xf0] }
  0x8b   :  { %v369_v61 = vmul.f32 0.5, %v353_v55  ;;  %v370_v35 = vmul.f32 0.5, %v354_v14  ;;  %v375_v0 = vpack.c.bf16 %v362_v27, %v361_v51  ;;  %v1725_v34 = vor.u32 %v2234_v48, %v1722_v59  ;;  %v1850_v55 = vld [vmem:[#allocation2 + $0x1a8] sm:$0xf0]  ;;  %v2216_v14 = vld [vmem:[#allocation2 + $0x14] sm:$0xf] }
  0x8c   :  { %v227_v52 = vunpack.c.l.bf16 %v216_v28  ;;  %v228_v6 = vunpack.c.h.bf16 %v216_v28  ;;  %v235_v15 = vunpack.c.l.bf16 %v220_v60  ;;  %v236_v16 = vunpack.c.h.bf16 %v220_v60  ;;  %1339 = vmatpush.bf16.msra.mxu2 %v1797_v41  ;;  %1353 = vmatpush.bf16.msra.mxu3 %v1861_v25  ;;  %v1650_v28 = vld [vmem:[#allocation2 + $0x18] sm:$0xf0]  ;;  %v2232_v60 = vld [vmem:[#allocation2 + $0x94] sm:$0xf]  ;;  %v2290_v41 = vld [vmem:[#allocation2 + $0x264] sm:$0xf] }
  0x8d   :  { %v379_v56 = vpack.c.bf16 %v370_v35, %v369_v61  ;;  %v385_v7 = vunpack.c.l.bf16 %v375_v0  ;;  %v386_v9 = vunpack.c.h.bf16 %v375_v0  ;;  %v1789_v49 = vor.u32 %v2250_v26, %v1786_v39  ;;  %v2248_v35 = vld [vmem:[#allocation2 + $0x114] sm:$0xf]  ;;  %v1778_v0 = vld [vmem:[#allocation2 + $0x118] sm:$0xf0]  ;;  %1326 = vmatpush.bf16.msra.mxu1 %v1725_v34  ;;  %v2010_v48 = vld [vmem:[#allocation2 + $0x2e8] sm:$0xf0] }
  0x8e   :  { %v243_v44 = vmul.f32 0.796875, %v227_v52  ;;  %v244_v8 = vmul.f32 0.796875, %v228_v6  ;;  %v251_v29 = vmul.f32 0.796875, %v235_v15  ;;  %v252_v24 = vmul.f32 0.796875, %v236_v16  ;;  %v2264_v52 = vld [vmem:[#allocation2 + $0x194] sm:$0xf] }
  0x8f   :  { %v393_v32 = vunpack.c.l.bf16 %v379_v56  ;;  %v401_v30 = vmul.f32 %v385_v7, %v2700_v10  ;;  %v394_v62 = vunpack.c.h.bf16 %v379_v56  ;;  %v402_v36 = vmul.f32 %v386_v9, %v2706_v23  ;;  %v1842_v15 = vld [vmem:[#allocation2 + $0x198] sm:$0xf0]  ;;  %v2214_v16 = vld [vmem:[#allocation2 + $0x4] sm:$0xf]  ;;  %v1642_v56 = vld [vmem:[#allocation2 + $0x8] sm:$0xf0] }
  0x90   :  { %v256_v17 = vpack.c.bf16 %v244_v8, %v243_v44  ;;  %v260_v1 = vpack.c.bf16 %v252_v24, %v251_v29  ;;  %v1661_v23 = vor.u32 %v2218_v46, %v1658_v47  ;;  %v1853_v27 = vor.u32 %v2266_v12, %v1850_v55  ;;  %1340 = vmatpush.bf16.msra.mxu2 %v1789_v49  ;;  %v2230_v44 = vld [vmem:[#allocation2 + $0x84] sm:$0xf]  ;;  %v1706_v8 = vld [vmem:[#allocation2 + $0x88] sm:$0xf0]  ;;  %v2292_v9 = vld [vmem:[#allocation2 + $0x274] sm:$0xf] }
  0x91   :  { %v409_v43 = vmul.f32 %v393_v32, %v2711_v37  ;;  %v410_v37 = vmul.f32 %v394_v62, %v2722_v18  ;;  %v1714_v18 = vld [vmem:[#allocation2 + $0x98] sm:$0xf0]  ;;  %v1653_v61 = vor.u32 %v2216_v14, %v1650_v28  ;;  %v1781_v6 = vor.u32 %v2248_v35, %v1778_v0  ;;  %v2246_v29 = vld [vmem:[#allocation2 + $0x104] sm:$0xf]  ;;  %v1770_v32 = vld [vmem:[#allocation2 + $0x108] sm:$0xf0] }
  0x92   :  { %v267_v10 = vunpack.c.l.bf16 %v256_v17  ;;  %v268_v2 = vunpack.c.h.bf16 %v256_v17  ;;  %v275_v40 = vunpack.c.l.bf16 %v260_v1  ;;  %v276_v22 = vunpack.c.h.bf16 %v260_v1  ;;  %1312 = vmatpush.bf16.msra.mxu0 %v1661_v23  ;;  %1354 = vmatpush.bf16.msra.mxu3 %v1853_v27  ;;  %v1954_v62 = vld [vmem:[#allocation2 + $0x278] sm:$0xf0]  ;;  %v2308_v17 = vld [vmem:[#allocation2 + $0x2f4] sm:$0xf]  ;;  %v2306_v47 = vld [vmem:[#allocation2 + $0x2e4] sm:$0xf] }
  0x93   :  { %v2893_v63 = vpack.c.bf16 %v409_v43, %v401_v30  ;;  %v2897_v51 = vpack.c.bf16 %v410_v37, %v402_v36  ;;  %v1717_v7 = vor.u32 %v2232_v60, %v1714_v18  ;;  %v1845_v24 = vor.u32 %v2264_v52, %v1842_v15  ;;  %v2262_v30 = vld [vmem:[#allocation2 + $0x184] sm:$0xf]  ;;  %v2288_v12 = vld [vmem:[#allocation2 + $0x254] sm:$0xf]  ;;  %v1938_v55 = vld [vmem:[#allocation2 + $0x258] sm:$0xf0] }
  0x94   :  { %2387 = vtanh.f32 %v267_v10  ;;  %v1645_v4 = vor.u32 %v2214_v16, %v1642_v56  ;;  %1341 = vmatpush.bf16.msra.mxu2 %v1781_v6  ;;  %v1773_v54 = vor.u32 %v2246_v29, %v1770_v32  ;;  %v1957_v21 = vor.u32 %v2292_v9, %v1954_v62  ;;  %v1946_v10 = vld [vmem:[#allocation2 + $0x268] sm:$0xf0]  ;;  %v2304_v27 = vld [vmem:[#allocation2 + $0x2d4] sm:$0xf]  ;;  %v2002_v28 = vld [vmem:[#allocation2 + $0x2d8] sm:$0xf0] }
  0x95   :  { %1259 = vmatmul.bf16.vlgmr.msrb.gmra.mxu0 %v2893_v63  ;;  %2389 = vtanh.f32 %v268_v2  ;;  %1273 = vmatmul.bf16.vlgmr.msrb.gmra.mxu1 %v2897_v51  ;;  %v1709_v5 = vor.u32 %v2230_v44, %v1706_v8  ;;  %v1837_v11 = vor.u32 %v2262_v30, %v1834_v58  ;;  %v2021_v36 = vor.u32 %v2308_v17, %v2018_v31  ;;  %v2286_v0 = vld [vmem:[#allocation2 + $0x244] sm:$0xf]  ;;  %v1930_v52 = vld [vmem:[#allocation2 + $0x248] sm:$0xf0]  ;;  %v2284_v30 = vld [vmem:[#allocation2 + $0x234] sm:$0xf] }
  0x96   :  { %2391 = vtanh.f32 %v275_v40  ;;  %1313 = vmatpush.bf16.msra.mxu0 %v1653_v61  ;;  %1327 = vmatpush.bf16.msra.mxu1 %v1717_v7  ;;  %v2013_v39 = vor.u32 %v2306_v47, %v2010_v48  ;;  %v1941_v14 = vor.u32 %v2288_v12, %v1938_v55  ;;  %v2005_v35 = vor.u32 %v2304_v27, %v2002_v28  ;;  %v2302_v7 = vld [vmem:[#allocation2 + $0x2c4] sm:$0xf]  ;;  %v1994_v44 = vld [vmem:[#allocation2 + $0x2c8] sm:$0xf0]  ;;  %v1922_v58 = vld [vmem:[#allocation2 + $0x238] sm:$0xf0] }
  0x97   :  { %2393 = vtanh.f32 %v276_v22  ;;  %1355 = vmatpush.bf16.msra.mxu3 %v1845_v24  ;;  %v1949_v22 = vor.u32 %v2290_v41, %v1946_v10  ;;  %v1933_v8 = vor.u32 %v2286_v0, %v1930_v52  ;;  %v2300_v62 = vld [vmem:[#allocation2 + $0x2b4] sm:$0xf]  ;;  %v1986_v17 = vld [vmem:[#allocation2 + $0x2b8] sm:$0xf0]  ;;  %v2294_v0 = vld [vmem:[#allocation2 + $0x284] sm:$0xf] }
  0x98   :  { %1342 = vmatpush.bf16.msra.mxu2 %v1773_v54  ;;  %v1925_v54 = vor.u32 %v2284_v30, %v1922_v58  ;;  %v2146_v41 = vld [vmem:[#allocation2 + $0x3f8] sm:$0xf0]  ;;  %v2320_v55 = vld [vmem:[#allocation2 + $0x354] sm:$0xf]  ;;  %v1962_v52 = vld [vmem:[#allocation2 + $0x288] sm:$0xf0] }
  0x99   :  { %v2336_v27 = vld [vmem:[#allocation2 + $0x3d4] sm:$0xf]  ;;  %v2130_v28 = vld [vmem:[#allocation2 + $0x3d8] sm:$0xf0] }
  0x9a   :  { %v2388_v3 = vpop.eup %2387  ;;  %1314 = vmatpush.bf16.msra.mxu0 %v1645_v4  ;;  %1328 = vmatpush.bf16.msra.mxu1 %v1709_v5  ;;  %v2340_v5 = vld [vmem:[#allocation2 + $0x3f4] sm:$0xf]  ;;  %v2050_v58 = vld [vmem:[#allocation2 + $0x338] sm:$0xf0] }
  0x9b   :  { %v2390_v1 = vpop.eup %2389  ;;  %1356 = vmatpush.bf16.msra.mxu3 %v1837_v11  ;;  %v2282_v11 = vld [vmem:[#allocation2 + $0x224] sm:$0xf]  ;;  %v2149_v48 = vor.u32 %v2340_v5, %v2146_v41  ;;  %v2316_v30 = vld [vmem:[#allocation2 + $0x334] sm:$0xf]  ;;  %v2098_v5 = vld [vmem:[#allocation2 + $0x398] sm:$0xf0] }
  0x9c   :  { %v2392_v33 = vpop.eup %2391  ;;  %v296_v43 = vpack.c.bf16 %v2390_v1, %v2388_v3  ;;  %v1997_v3 = vor.u32 %v2302_v7, %v1994_v44  ;;  %v2324_v1 = vld [vmem:[#allocation2 + $0x374] sm:$0xf]  ;;  %v2334_v7 = vld [vmem:[#allocation2 + $0x3c4] sm:$0xf]  ;;  %v2122_v44 = vld [vmem:[#allocation2 + $0x3c8] sm:$0xf0] }
  0x9d   :  { %v2394_v57 = vpop.eup %2393 }
  0x9e   :  { %v300_v2 = vpack.c.bf16 %v2394_v57, %v2392_v33  ;;  %v307_v40 = vunpack.c.l.bf16 %v296_v43  ;;  %v308_v46 = vunpack.c.h.bf16 %v296_v43  ;;  %1363 = vmatpush.bf16.msrb.mxu0 %v1957_v21  ;;  %1377 = vmatpush.bf16.msrb.mxu1 %v2021_v36  ;;  %v2082_v43 = vld [vmem:[#allocation2 + $0x378] sm:$0xf0]  ;;  %v1989_v57 = vor.u32 %v2300_v62, %v1986_v17  ;;  %v1914_v36 = vld [vmem:[#allocation2 + $0x228] sm:$0xf0]  ;;  %v2314_v62 = vld [vmem:[#allocation2 + $0x324] sm:$0xf] }
  0x9f   :  { %v2085_v47 = vor.u32 %v2324_v1, %v2082_v43  ;;  %v2042_v17 = vld [vmem:[#allocation2 + $0x328] sm:$0xf0]  ;;  %v2330_v1 = vld [vmem:[#allocation2 + $0x3a4] sm:$0xf]  ;;  %v2328_v43 = vld [vmem:[#allocation2 + $0x394] sm:$0xf] }
  0xa0   :  { %v315_v25 = vunpack.c.l.bf16 %v300_v2  ;;  %v316_v37 = vunpack.c.h.bf16 %v300_v2  ;;  %v323_v59 = vadd.f32 1.0, %v307_v40  ;;  %v324_v26 = vadd.f32 1.0, %v308_v46  ;;  %v2298_v40 = vld [vmem:[#allocation2 + $0x2a4] sm:$0xf]  ;;  %v1978_v46 = vld [vmem:[#allocation2 + $0x2a8] sm:$0xf0] }
  0xa2   :  { %v331_v23 = vadd.f32 1.0, %v315_v25  ;;  %v332_v34 = vadd.f32 1.0, %v316_v37  ;;  %v336_v49 = vpack.c.bf16 %v324_v26, %v323_v59  ;;  %1364 = vmatpush.bf16.msrb.mxu0 %v1949_v22  ;;  %1378 = vmatpush.bf16.msrb.mxu1 %v2013_v39  ;;  %v2322_v22 = vld [vmem:[#allocation2 + $0x364] sm:$0xf]  ;;  %v2074_v25 = vld [vmem:[#allocation2 + $0x368] sm:$0xf0]  ;;  %v1917_v26 = vor.u32 %v2282_v11, %v1914_v36 }
  0xa3   :  { %v2338_v37 = vld [vmem:[#allocation2 + $0x3e4] sm:$0xf]  ;;  %v2138_v59 = vld [vmem:[#allocation2 + $0x3e8] sm:$0xf0]  ;;  %v1981_v39 = vor.u32 %v2298_v40, %v1978_v46  ;;  %v2924_v40 = vld [vmem:[%s2984_s2] sm:$0x3] }
  0xa4   :  { %v340_v60 = vpack.c.bf16 %v332_v34, %v331_v23  ;;  %v347_v18 = vunpack.c.l.bf16 %v336_v49  ;;  %v348_v61 = vunpack.c.h.bf16 %v336_v49  ;;  %v2280_v23 = vld [vmem:[#allocation2 + $0x214] sm:$0xf]  ;;  %v1970_v34 = vld [vmem:[#allocation2 + $0x298] sm:$0xf0]  ;;  %v2077_v49 = vor.u32 %v2322_v22, %v2074_v25  ;;  %v2310_v11 = vld [vmem:[#allocation2 + $0x304] sm:$0xf] }
  0xa5   :  { %1315 = vmatmul.bf16.vlgmr.msra.gmra.mxu0 %v2840_v38  ;;  %1329 = vmatmul.bf16.vlgmr.msra.gmra.mxu1 %v2842_v13  ;;  %v2141_v12 = vor.u32 %v2338_v37, %v2138_v59  ;;  %v2326_v36 = vld [vmem:[#allocation2 + $0x384] sm:$0xf]  ;;  %v2348_v22 = vld [vmem:[%s2985_s3 + $0x30] sm:$0xff]  ;;  %v2347_v25 = vld [vmem:[%s2985_s3 + $0x28] sm:$0xff] }
  0xa6   :  { %v355_v6 = vunpack.c.l.bf16 %v340_v60  ;;  %v356_v15 = vunpack.c.h.bf16 %v340_v60  ;;  %v363_v16 = vmul.f32 0.5, %v347_v18  ;;  %v364_v56 = vmul.f32 0.5, %v348_v61  ;;  %1365 = vmatpush.bf16.msrb.mxu0 %v1941_v14  ;;  %1379 = vmatpush.bf16.msrb.mxu1 %v2005_v35  ;;  %v2066_v14 = vld [vmem:[#allocation2 + $0x358] sm:$0xf0]  ;;  %v2278_v61 = vld [vmem:[#allocation2 + $0x204] sm:$0xf] }
  0xa7   :  { %v1898_v35 = vld [vmem:[#allocation2 + $0x208] sm:$0xf0] }
  0xa8   :  { %v371_v29 = vmul.f32 0.5, %v355_v6  ;;  %v372_v24 = vmul.f32 0.5, %v356_v15  ;;  %v376_v32 = vpack.c.bf16 %v364_v56, %v363_v16  ;;  %v2069_v6 = vor.u32 %v2320_v55, %v2066_v14  ;;  %v2318_v16 = vld [vmem:[#allocation2 + $0x344] sm:$0xf]  ;;  %v2058_v56 = vld [vmem:[#allocation2 + $0x348] sm:$0xf0] }
  0xa9   :  { %v2133_v15 = vor.u32 %v2336_v27, %v2130_v28  ;;  %v2344_v27 = vld [vmem:[%s2985_s3 + $0x10] sm:$0xff] }
  0xaa   :  { %v380_v38 = vpack.c.bf16 %v372_v24, %v371_v29  ;;  %v387_v4 = vunpack.c.l.bf16 %v376_v32  ;;  %v388_v9 = vunpack.c.h.bf16 %v376_v32  ;;  %1366 = vmatpush.bf16.msrb.mxu0 %v1933_v8  ;;  %1380 = vmatpush.bf16.msrb.mxu1 %v1997_v3  ;;  %v1901_v8 = vor.u32 %v2278_v61, %v1898_v35  ;;  %v2332_v3 = vld [vmem:[#allocation2 + $0x3b4] sm:$0xf]  ;;  %v2343_v35 = vld [vmem:[%s2985_s3 + $0x8] sm:$0xff] }
  0xab   :  { %v1965_v29 = vor.u32 %v2294_v0, %v1962_v52  ;;  %v2061_v24 = vor.u32 %v2318_v16, %v2058_v56  ;;  %v2125_v32 = vor.u32 %v2334_v7, %v2122_v44  ;;  %v2342_v56 = vld [vmem:[%s2985_s3] sm:$0xff] }
  0xac   :  { %v395_v21 = vunpack.c.l.bf16 %v380_v38  ;;  %v403_v31 = vmul.f32 %v387_v4, %v2824_v45  ;;  %v396_v13 = vunpack.c.h.bf16 %v380_v38  ;;  %v404_v33 = vmul.f32 %v388_v9, %v2826_v42  ;;  %v2114_v38 = vld [vmem:[#allocation2 + $0x3b8] sm:$0xf0] }
  0xad   :  { %v2053_v4 = vor.u32 %v2316_v30, %v2050_v58  ;;  %v2117_v9 = vor.u32 %v2332_v3, %v2114_v38 }
  0xae   :  { %v411_v10 = vmul.f32 %v395_v21, %v2828_v19  ;;  %v412_v2 = vmul.f32 %v396_v13, %v2830_v20  ;;  %1367 = vmatpush.bf16.msrb.mxu0 %v1925_v54  ;;  %1381 = vmatpush.bf16.msrb.mxu1 %v1989_v57  ;;  %v1906_v19 = vld [vmem:[#allocation2 + $0x218] sm:$0xf0]  ;;  %v2296_v20 = vld [vmem:[#allocation2 + $0x294] sm:$0xf]  ;;  %v2106_v54 = vld [vmem:[#allocation2 + $0x3a8] sm:$0xf0]  ;;  %v2045_v21 = vor.u32 %v2314_v62, %v2042_v17 }
  0xaf   :  { %v1909_v60 = vor.u32 %v2280_v23, %v1906_v19  ;;  %v1973_v18 = vor.u32 %v2296_v20, %v1970_v34  ;;  %v2312_v13 = vld [vmem:[#allocation2 + $0x314] sm:$0xf]  ;;  %v2101_v57 = vor.u32 %v2328_v43, %v2098_v5  ;;  %v2346_v23 = vld [vmem:[%s2985_s3 + $0x20] sm:$0xff]  ;;  %v2345_v20 = vld [vmem:[%s2985_s3 + $0x18] sm:$0xff] }
  0xb0   :  { %v2906_v45 = vpack.c.bf16 %v411_v10, %v403_v31  ;;  %v2908_v42 = vpack.c.bf16 %v412_v2, %v404_v33  ;;  %v2109_v31 = vor.u32 %v2330_v1, %v2106_v54  ;;  %v2034_v33 = vld [vmem:[#allocation2 + $0x318] sm:$0xf0] }
  0xb1   :  { %v2037_v41 = vor.u32 %v2312_v13, %v2034_v33  ;;  %v2349_v2 = vld [vmem:[%s2985_s3 + $0x38] sm:$0xff] }
  0xb2   :  { %1287 = vmatmul.bf16.vlgmr.msrb.gmra.mxu2 %v2906_v45  ;;  %1301 = vmatmul.bf16.vlgmr.msrb.gmra.mxu3 %v2908_v42 }
  0xb3   :  { %1391 = vmatpush.bf16.msrb.mxu2 %v2085_v47  ;;  %1405 = vmatpush.bf16.msrb.mxu3 %v2149_v48  ;;  %v551_v48 = vperm.slane %v2924_v40, 0 }
  0xb4   :  { %1368 = vmatpush.bf16.msrb.mxu0 %v1917_v26  ;;  %1382 = vmatpush.bf16.msrb.mxu1 %v1981_v39 }
  0xb7   :  { %1392 = vmatpush.bf16.msrb.mxu2 %v2077_v49  ;;  %1406 = vmatpush.bf16.msrb.mxu3 %v2141_v12 }
  0xb8   :  { %1369 = vmatpush.bf16.msrb.mxu0 %v1909_v60  ;;  %1383 = vmatpush.bf16.msrb.mxu1 %v1973_v18 }
  0xbb   :  { %1393 = vmatpush.bf16.msrb.mxu2 %v2069_v6  ;;  %1407 = vmatpush.bf16.msrb.mxu3 %v2133_v15 }
  0xbc   :  { %1370 = vmatpush.bf16.msrb.mxu0 %v1901_v8  ;;  %1384 = vmatpush.bf16.msrb.mxu1 %v1965_v29 }
  0xbf   :  { %1394 = vmatpush.bf16.msrb.mxu2 %v2061_v24  ;;  %1408 = vmatpush.bf16.msrb.mxu3 %v2125_v32 }
  0xc0   :  { %1371 = vmatmul.bf16.vlgmr.msrb.gmra.mxu0 %v2893_v63  ;;  %1385 = vmatmul.bf16.vlgmr.msrb.gmra.mxu1 %v2897_v51  ;;  %v2026_v63 = vld [vmem:[#allocation2 + $0x308] sm:$0xf0] }
  0xc1   :  { %v2090_v51 = vld [vmem:[#allocation2 + $0x388] sm:$0xf0]  ;;  %1589 = vmatpush.bf16.msra.mxu0 %v2349_v2  ;;  %v2356_v2 = vld [vmem:[%s2985_s3 + $0x70] sm:$0xff] }
  0xc2   :  { %1343 = vmatmul.bf16.vlgmr.msra.gmra.mxu2 %v2862_v50  ;;  %1357 = vmatmul.bf16.vlgmr.msra.gmra.mxu3 %v2864_v53  ;;  %v2029_v50 = vor.u32 %v2310_v11, %v2026_v63  ;;  %v2093_v53 = vor.u32 %v2326_v36, %v2090_v51  ;;  %v2357_v11 = vld [vmem:[%s2985_s3 + $0x78] sm:$0xff] }
  0xc3   :  { %1395 = vmatpush.bf16.msrb.mxu2 %v2053_v4  ;;  %1409 = vmatpush.bf16.msrb.mxu3 %v2117_v9  ;;  %v552_v9 = vperm.slane %v2924_v40, 1 }
  0xc4   :  { %1603 = vmatpush.bf16.msra.mxu1 %v2357_v11  ;;  %v2362_v11 = vld [vmem:[%s2986_s4] ss:$0 sm:$0xff] }
  0xc5   :  { %1590 = vmatpush.bf16.msra.mxu0 %v2348_v22 }
  0xc7   :  { %1396 = vmatpush.bf16.msrb.mxu2 %v2045_v21  ;;  %1410 = vmatpush.bf16.msrb.mxu3 %v2109_v31 }
  0xc8   :  { %1604 = vmatpush.bf16.msra.mxu1 %v2356_v2 }
  0xc9   :  { %1591 = vmatpush.bf16.msra.mxu0 %v2347_v25 }
  0xcb   :  { %1397 = vmatpush.bf16.msrb.mxu2 %v2037_v41  ;;  %1411 = vmatpush.bf16.msrb.mxu3 %v2101_v57 }
  0xcd   :  { %1592 = vmatpush.bf16.msra.mxu0 %v2346_v23 }
  0xcf   :  { %1398 = vmatpush.bf16.msrb.mxu2 %v2029_v50  ;;  %1412 = vmatpush.bf16.msrb.mxu3 %v2093_v53 }
  0xd1   :  { %1593 = vmatpush.bf16.msra.mxu0 %v2345_v20 }
  0xd2   :  { %1399 = vmatmul.bf16.vlgmr.msrb.gmra.mxu2 %v2906_v45  ;;  %1413 = vmatmul.bf16.vlgmr.msrb.gmra.mxu3 %v2908_v42 }
  0xd5   :  { %1594 = vmatpush.bf16.msra.mxu0 %v2344_v27 }
  0xd9   :  { %1595 = vmatpush.bf16.msra.mxu0 %v2343_v35 }
  0xdd   :  { %1596 = vmatpush.bf16.msra.mxu0 %v2342_v56 }
  0xf1   :  { %v1204_v10 = vpop.f32.mrf.mxu0  ;;  %v1218_v46 = vpop.f32.mrf.mxu1 }
  0xf2   :  { %v1205_v42 = vadd.f32 %v1204_v10, %v551_v48 }
  0xf4   :  { %v1219_v26 = vadd.f32 %v1218_v46, %v1205_v42 }
  0xf9   :  { %v1206_v47 = vpop.f32.mrf.mxu0  ;;  %v1220_v59 = vpop.f32.mrf.mxu1 }
  0xfa   :  { %v1207_v49 = vadd.f32 %v1206_v47, %v551_v48 }
  0xfc   :  { %v1232_v45 = vpop.f32.mrf.mxu2  ;;  %v1246_v37 = vpop.f32.mrf.mxu3  ;;  %v1221_v28 = vadd.f32 %v1220_v59, %v1207_v49 }
  0xfd   :  { %v1233_v19 = vadd.f32 %v1232_v45, %v1219_v26  ;;  %v2355_v45 = vld [vmem:[%s2985_s3 + $0x68] sm:$0xff] }
  0xfe   :  { %1605 = vmatpush.bf16.msra.mxu1 %v2355_v45 }
  0xff   :  { %v1247_v14 = vadd.f32 %v1246_v37, %v1233_v19 }
 0x104   :  { %v1234_v34 = vpop.f32.mrf.mxu2  ;;  %v1248_v12 = vpop.f32.mrf.mxu3 }
 0x105   :  { %v1235_v61 = vadd.f32 %v1234_v34, %v1221_v28  ;;  %v2353_v28 = vld [vmem:[%s2985_s3 + $0x58] sm:$0xff] }
 0x107   :  { %v1249_v15 = vadd.f32 %v1248_v12, %v1235_v61 }
 0x112   :  { %v1260_v39 = vpop.f32.mrf.mxu0  ;;  %v1274_v55 = vpop.f32.mrf.mxu1 }
 0x113   :  { %v1261_v60 = vadd.f32 %v1260_v39, %v1247_v14  ;;  %v2354_v39 = vld [vmem:[%s2985_s3 + $0x60] sm:$0xff] }
 0x114   :  { %1606 = vmatpush.bf16.msra.mxu1 %v2354_v39 }
 0x115   :  { %v1275_v0 = vadd.f32 %v1274_v55, %v1261_v60 }
 0x118   :  { %1607 = vmatpush.bf16.msra.mxu1 %v2353_v28 }
 0x11a   :  { %v1262_v18 = vpop.f32.mrf.mxu0  ;;  %v1276_v7 = vpop.f32.mrf.mxu1 }
 0x11b   :  { %v1263_v44 = vadd.f32 %v1262_v18, %v1249_v15 }
 0x11d   :  { %v1277_v30 = vadd.f32 %v1276_v7, %v1263_v44  ;;  %v2351_v7 = vld [vmem:[%s2985_s3 + $0x48] sm:$0xff] }
 0x122   :  { %v1316_v29 = vpop.f32.mrf.mxu0  ;;  %v1330_v62 = vpop.f32.mrf.mxu1 }
 0x123   :  { %v1317_v31 = vadd.f32 %v1316_v29, %v552_v9 }
 0x125   :  { %v1331_v57 = vadd.f32 %v1330_v62, %v1317_v31 }
 0x12a   :  { %v1318_v13 = vpop.f32.mrf.mxu0  ;;  %v1332_v36 = vpop.f32.mrf.mxu1 }
 0x12b   :  { %v1319_v53 = vadd.f32 %v1318_v13, %v552_v9 }
 0x12d   :  { %v1333_v22 = vadd.f32 %v1332_v36, %v1319_v53 }
 0x135   :  { %v1288_v52 = vpop.f32.mrf.mxu2  ;;  %v1302_v6 = vpop.f32.mrf.mxu3 }
 0x136   :  { %v1289_v16 = vadd.f32 %v1288_v52, %v1275_v0  ;;  %v2352_v0 = vld [vmem:[%s2985_s3 + $0x50] sm:$0xff] }
 0x137   :  { %1608 = vmatpush.bf16.msra.mxu1 %v2352_v0 }
 0x138   :  { %v1303_v8 = vadd.f32 %v1302_v6, %v1289_v16 }
 0x13a   :  { %v1419_v24 = vmul.f32 %v1303_v8, %v1303_v8 }
 0x13b   :  { %1609 = vmatpush.bf16.msra.mxu1 %v2351_v7 }
 0x13c   :  { %v1423_v32 = vmul.f32 %v1419_v24, %v1303_v8 }
 0x13d   :  { %v1290_v58 = vpop.f32.mrf.mxu2  ;;  %v1304_v3 = vpop.f32.mrf.mxu3 }
 0x13e   :  { %v1427_v38 = vmul.f32 0.044715, %v1423_v32  ;;  %v1291_v4 = vadd.f32 %v1290_v58, %v1277_v30  ;;  %v1372_v10 = vpop.f32.mrf.mxu0  ;;  %v1386_v37 = vpop.f32.mrf.mxu1  ;;  %v2350_v58 = vld [vmem:[%s2985_s3 + $0x40] sm:$0xff] }
 0x13f   :  { %1610 = vmatpush.bf16.msra.mxu1 %v2350_v58 }
 0x140   :  { %v1431_v17 = vadd.f32 %v1427_v38, %v1303_v8  ;;  %v1305_v1 = vadd.f32 %v1304_v3, %v1291_v4 }
 0x142   :  { %v1435_v54 = vmul.f32 0.7978846, %v1431_v17  ;;  %v1421_v21 = vmul.f32 %v1305_v1, %v1305_v1 }
 0x144   :  { %v1425_v33 = vmul.f32 %v1421_v21, %v1305_v1  ;;  %2395 = vtanh.f32 %v1435_v54 }
 0x145   :  { %v1344_v43 = vpop.f32.mrf.mxu2  ;;  %v1358_v5 = vpop.f32.mrf.mxu3 }
 0x146   :  { %v1429_v41 = vmul.f32 0.044715, %v1425_v33  ;;  %v1345_v50 = vadd.f32 %v1344_v43, %v1331_v57  ;;  %v1374_v34 = vpop.f32.mrf.mxu0  ;;  %v1388_v15 = vpop.f32.mrf.mxu1 }
 0x148   :  { %v1433_v63 = vadd.f32 %v1429_v41, %v1305_v1  ;;  %v1359_v48 = vadd.f32 %v1358_v5, %v1345_v50 }
 0x14a   :  { %v1437_v51 = vmul.f32 0.7978846, %v1433_v63  ;;  %v2396_v40 = vpop.eup %2395  ;;  %v1373_v25 = vadd.f32 %v1372_v10, %v1359_v48 }
 0x14b   :  { %v1443_v42 = vadd.f32 1.0, %v2396_v40 }
 0x14c   :  { %2397 = vtanh.f32 %v1437_v51  ;;  %v1387_v20 = vadd.f32 %v1386_v37, %v1373_v25 }
 0x14d   :  { %v1346_v46 = vpop.f32.mrf.mxu2  ;;  %v1360_v47 = vpop.f32.mrf.mxu3  ;;  %v1447_v23 = vmul.f32 0.5, %v1443_v42 }
 0x14e   :  { %v1347_v26 = vadd.f32 %v1346_v46, %v1333_v22 }
 0x14f   :  { %v1451_v60 = vmul.f32 %v1447_v23, %v1303_v8 }
 0x150   :  { %v1361_v14 = vadd.f32 %v1360_v47, %v1347_v26 }
 0x152   :  { %v2398_v59 = vpop.eup %2397  ;;  %v1375_v35 = vadd.f32 %v1374_v34, %v1361_v14 }
 0x153   :  { %v1445_v19 = vadd.f32 1.0, %v2398_v59 }
 0x154   :  { %v1389_v56 = vadd.f32 %v1388_v15, %v1375_v35 }
 0x155   :  { %v1449_v49 = vmul.f32 0.5, %v1445_v19  ;;  %v1400_v12 = vpop.f32.mrf.mxu2  ;;  %v1414_v55 = vpop.f32.mrf.mxu3 }
 0x156   :  { %v1401_v27 = vadd.f32 %v1400_v12, %v1387_v20 }
 0x157   :  { %v1453_v18 = vmul.f32 %v1449_v49, %v1305_v1 }
 0x158   :  { %v1415_v61 = vadd.f32 %v1414_v55, %v1401_v27 }
 0x159   :  { %v1455_v52 = vpack.c.bf16 %v1453_v18, %v1451_v60 }
 0x15a   :  { %v1420_v6 = vmul.f32 %v1415_v61, %v1415_v61 }
 0x15b   :  { %1597 = vmatmul.bf16.vlgmr.msra.gmra.mxu0 %v1455_v52 }
 0x15c   :  { %v1424_v16 = vmul.f32 %v1420_v6, %v1415_v61 }
 0x15d   :  { %v1402_v44 = vpop.f32.mrf.mxu2  ;;  %v1416_v24 = vpop.f32.mrf.mxu3 }
 0x15e   :  { %v1428_v8 = vmul.f32 0.044715, %v1424_v16  ;;  %v1403_v29 = vadd.f32 %v1402_v44, %v1389_v56 }
 0x160   :  { %v1432_v32 = vadd.f32 %v1428_v8, %v1415_v61  ;;  %v1417_v30 = vadd.f32 %v1416_v24, %v1403_v29 }
 0x162   :  { %v1436_v3 = vmul.f32 0.7978846, %v1432_v32  ;;  %v1422_v38 = vmul.f32 %v1417_v30, %v1417_v30 }
 0x164   :  { %v1426_v4 = vmul.f32 %v1422_v38, %v1417_v30  ;;  %2399 = vtanh.f32 %v1436_v3 }
 0x166   :  { %v1430_v9 = vmul.f32 0.044715, %v1426_v4 }
 0x168   :  { %v1434_v62 = vadd.f32 %v1430_v9, %v1417_v30 }
 0x16a   :  { %v1438_v17 = vmul.f32 0.7978846, %v1434_v62  ;;  %v2400_v1 = vpop.eup %2399 }
 0x16b   :  { %v1444_v54 = vadd.f32 1.0, %v2400_v1 }
 0x16c   :  { %2401 = vtanh.f32 %v1438_v17 }
 0x16d   :  { %v1448_v31 = vmul.f32 0.5, %v1444_v54 }
 0x16f   :  { %v1452_v43 = vmul.f32 %v1448_v31, %v1415_v61 }
 0x172   :  { %v2402_v21 = vpop.eup %2401 }
 0x173   :  { %v1446_v13 = vadd.f32 1.0, %v2402_v21 }
 0x175   :  { %v1450_v33 = vmul.f32 0.5, %v1446_v13 }
 0x177   :  { %v1454_v5 = vmul.f32 %v1450_v33, %v1417_v30 }
 0x179   :  { %v1456_v41 = vpack.c.bf16 %v1454_v5, %v1452_v43 }
 0x17b   :  { %1611 = vmatmul.bf16.vlgmr.msra.gmra.mxu1 %v1456_v41 }
 0x1d8   :  { %v1598_v57 = vpop.f32.mrf.mxu0 }
 0x1d9   :  { %v1599_v63 = vadd.f32 %v2362_v11, %v1598_v57 }
 0x1e0   :  { %v1600_v50 = vpop.f32.mrf.mxu0 }
 0x1e1   :  { %v1601_v53 = vadd.f32 %v2362_v11, %v1600_v50 }
 0x1f8   :  { %v1612_v36 = vpop.f32.mrf.mxu1 }
 0x1f9   :  { %v1613_v51 = vadd.f32 %v1612_v36, %v1599_v63 }
 0x1fb   :  { %1617 = vst [vmem:[#allocation5] sm:$0xff] %v1613_v51 }
 0x200   :  { %v1614_v10 = vpop.f32.mrf.mxu1 }
 0x201   :  { %v1615_v2 = vadd.f32 %v1614_v10, %v1601_v53 }
 0x203   :  { %1618 = vst [vmem:[#allocation5 + $0x8] sm:$0xff] %v1615_v2 }
 0x204   :  { %1631 = dma.vmem_to_hbm [thread:$0]  %s1624_s15, 256, %s1626_s18, [#allocation4], %s2456_s23, %s2456_s23, %s2457_s24  }
 0x205   :  { %2453 = dma.done.wait [#allocation4], 256  }
 0x206   :  { %2454 = vsyncadd [#allocation4], 4294967040 }
 0x207   :  { %1636 = vsyncpa [#allocation3], 1 }
 0x208   :  { %1637 = vsyncpa [#allocation4], 1 }

</bundles_post_ra>
